<compile_context>
chip_gen: v7x
topology: tpu7x:2x2x1
jax: 0.10.0
libtpu: 0.0.40
codegen_flags: <defaults>
</compile_context>

<pallas_src>
import functools

import jax
import jax.numpy as jnp
import numpy as np
from jax.experimental import pallas as pl
from jax.experimental.pallas import tpu as pltpu

N_BINS = 15
N_CORES = 2              # leading "parallel" grid axis (v7x dual TensorCore)
DEFAULT_TILE_N = 8192    # sample tile (lanes) before clamping to batch / VMEM


def _round_up(x, m):
    return ((x + m - 1) // m) * m


def _classwise_ece_kernel(logits_ref, labels_ref, sums_ref, *,
                          n_total, n_bins, tiles_per_core):
    p = pl.program_id(0)          # core / slab axis ("parallel")
    t = pl.program_id(1)          # sample-tile axis ("arbitrary" reduction)
    c_pad, tile_n = logits_ref.shape
    n_chunks = tile_n // 128

    @pl.when(t == 0)
    def _init():                  # fresh accumulator slab per core
        sums_ref[...] = jnp.zeros_like(sums_ref)

    logits = logits_ref[...].astype(jnp.float32)               # (C_pad, TN)
    labels = labels_ref[...]                                    # (1, TN) int32

    # Softmax over the class (sublane) axis; samples stay lane-dense.
    m = jnp.max(logits, axis=0, keepdims=True)                  # (1, TN)
    e = jnp.exp(logits - m)
    denom = jnp.sum(e, axis=0, keepdims=True)                   # (1, TN)
    inv = pl.reciprocal(denom, approx=True)                     # EUP, ~free slot
    sm = e * inv                                                # (C_pad, TN)

    # Valid-lane mask: handles the partial last tile and phantom (clamped)
    # blocks past the end of the batch.
    lane = jax.lax.broadcasted_iota(jnp.int32, (1, tile_n), 1)
    global_pos = (p * tiles_per_core + t) * tile_n + lane
    valid = global_pos < n_total                                # (1, TN)

    # Per-element bin index: sm in (k/n_bins, (k+1)/n_bins]  ->  bidx == k.
    # Clip the top (approx reciprocal can nudge sm slightly above 1.0);
    # invalid lanes get -1 and never match any bin.  Padded class rows have
    # sm ~ 0 -> bidx == -1 as well.
    bidx = jnp.ceil(sm * jnp.float32(n_bins)).astype(jnp.int32) - 1
    bidx = jnp.minimum(bidx, n_bins - 1)
    bidx = jnp.where(valid, bidx, -1)                           # (C_pad, TN)

    class_iota = jax.lax.broadcasted_iota(jnp.int32, (c_pad, tile_n), 0)
    onehot = (class_iota == labels).astype(jnp.float32)         # (C_pad, TN)

    # Bins outer (15), 128-lane chunks inner: only 3 live accumulator vregs,
    # pure VPU (no XLU cross-lane reduce, no lane scatter), and 3 tile-aligned
    # (C_pad, 128) read-modify-writes per bin.
    for b in range(n_bins):                                     # unrolled
        cnt = jnp.zeros((c_pad, 128), jnp.float32)
        conf = jnp.zeros((c_pad, 128), jnp.float32)
        acc = jnp.zeros((c_pad, 128), jnp.float32)
        for j in range(n_chunks):                               # unrolled
            lo, hi = j * 128, (j + 1) * 128
            mb = bidx[:, lo:hi] == b                            # 1 cmp / chunk
            cnt = cnt + mb.astype(jnp.float32)
            conf = conf + jnp.where(mb, sm[:, lo:hi], 0.0)
            acc = acc + jnp.where(mb, onehot[:, lo:hi], 0.0)
        base = b * 3 * c_pad
        sums_ref[base:base + c_pad, :] += cnt
        sums_ref[base + c_pad:base + 2 * c_pad, :] += conf
        sums_ref[base + 2 * c_pad:base + 3 * c_pad, :] += acc


@functools.partial(jax.jit, static_argnames=("n_bins", "tile_n"))
def classwise_ece_loss(logits, labels, *, n_bins=N_BINS, tile_n=DEFAULT_TILE_N):
    """Classwise ECE.  logits: [N, C] float, labels: [N] int.  Returns scalar."""
    n, c = logits.shape
    assert n_bins >= 1
    c_pad = _round_up(max(c, 1), 8)

    # --- VMEM-aware tile sizing --------------------------------------------
    in_bytes = jnp.dtype(logits.dtype).itemsize
    acc_rows = 3 * n_bins * c_pad
    acc_bytes = 2 * acc_rows * 128 * 4            # double-buffered output block
    # Per-lane footprint: double-buffered logits+labels tiles plus ~5 f32/i32
    # (C_pad, TN) intermediates the kernel materializes (f32 cast, exp, sm,
    # onehot, bidx).
    per_lane = c_pad * (2 * in_bytes + 5 * 4) + 2 * 4
    tile_budget = max(2 << 20, (24 << 20) - acc_bytes)
    tile_cap = max(128, (tile_budget // per_lane) // 128 * 128)
    tile = max(128, min(_round_up(tile_n, 128), tile_cap, _round_up(n, 128)))
    num_tiles = pl.cdiv(n, tile)
    tiles_per_core = pl.cdiv(num_tiles, N_CORES)
    vmem_limit = int(min(64 << 20, max(32 << 20, acc_bytes + tile_budget + (8 << 20))))
    # TODO(synk): very large C (~1000+) makes the per-lane accumulator slab
    # approach VMEM-heavy; an MXU-based bin reduction would be the right path.

    # --- Inputs: logits transposed to [C_pad, N] in NATIVE dtype ------------
    logits_t = jnp.transpose(logits)                            # (C, N)
    if c_pad != c:
        # Pad class rows with a very negative logit -> softmax ~0 -> no bin.
        logits_t = jnp.pad(logits_t, ((0, c_pad - c), (0, 0)),
                           constant_values=-1e9)
    labels2d = labels.astype(jnp.int32).reshape(1, n)           # (1, N)

    def sample_block(p, t):
        # Clamp phantom blocks (core-padded grid) to the last real block; the
        # in-kernel valid mask zeroes their contribution.
        return (0, jnp.minimum(p * tiles_per_core + t, num_tiles - 1))

    kernel = functools.partial(
        _classwise_ece_kernel,
        n_total=n, n_bins=n_bins, tiles_per_core=tiles_per_core)

    sums = pl.pallas_call(
        kernel,
        out_shape=jax.ShapeDtypeStruct((N_CORES * acc_rows, 128), jnp.float32),
        grid_spec=pltpu.PrefetchScalarGridSpec(
            num_scalar_prefetch=0,
            grid=(N_CORES, tiles_per_core),
            in_specs=[
                pl.BlockSpec((c_pad, tile), sample_block),      # logits tile
                pl.BlockSpec((1, tile), sample_block),          # labels tile
            ],
            out_specs=pl.BlockSpec((acc_rows, 128), lambda p, t: (p, 0)),
        ),
        compiler_params=pltpu.CompilerParams(
            dimension_semantics=("parallel", "arbitrary"),
            vmem_limit_bytes=vmem_limit,
        ),
    )(logits_t, labels2d)

    # --- Epilogue (tiny, plain JAX): lane reduce + calibration-error math ---
    tot = sums.reshape(N_CORES, n_bins, 3, c_pad, 128).sum(axis=(0, 4))
    counts = tot[:, 0, :c]                                      # (n_bins, C)
    conf_sums = tot[:, 1, :c]
    acc_sums = tot[:, 2, :c]

    nonempty = counts > 0.0
    safe = jnp.where(nonempty, counts, 1.0)
    avg_conf = conf_sums / safe
    avg_acc = acc_sums / safe
    prop = counts / jnp.float32(n)
    per_class = jnp.sum(
        jnp.where(nonempty, jnp.abs(avg_conf - avg_acc) * prop, 0.0), axis=0)

    # torch: num_classes = int(max(labels) + 1); mean over those classes only.
    num_classes = jnp.max(labels).astype(jnp.int32) + 1
    class_mask = jnp.arange(c, dtype=jnp.int32) < num_classes
    sce = jnp.sum(jnp.where(class_mask, per_class, 0.0)) / num_classes.astype(jnp.float32)
    return sce


def _classwise_ece_reference(logits, labels, n_bins=N_BINS):
    """Pure numpy reproduction of the PyTorch forward, for verification."""
    logits = np.asarray(logits, np.float32)
    labels = np.asarray(labels)
    num_classes = int(labels.max()) + 1
    e = np.exp(logits - logits.max(axis=1, keepdims=True))
    sm = e / e.sum(axis=1, keepdims=True)
    bounds = np.linspace(0.0, 1.0, n_bins + 1).astype(np.float32)
    per_class = []
    for i in range(num_classes):
        conf = sm[:, i]
        in_class = (labels == i)
        class_sce = 0.0
        for lo, hi in zip(bounds[:-1], bounds[1:]):
            in_bin = (conf > lo) & (conf <= hi)
            prop = in_bin.astype(np.float32).mean()
            if prop > 0:
                acc = in_class[in_bin].astype(np.float32).mean()
                avg_c = conf[in_bin].mean()
                class_sce += abs(avg_c - acc) * prop
        per_class.append(class_sce)
    return np.float32(np.mean(per_class))


if __name__ == "__main__":
    key = jax.random.PRNGKey(0)
    k1, k2 = jax.random.split(key)
    N, C = 256, 8
    logits = jax.random.normal(k1, (N, C), jnp.float32) * 3.0
    labels = jax.random.randint(k2, (N,), 0, C, jnp.int32)

    out = jax.block_until_ready(classwise_ece_loss(logits, labels))

    ref = _classwise_ece_reference(np.asarray(logits), np.asarray(labels))
    np.testing.assert_allclose(np.asarray(out), ref, rtol=1e-3, atol=2e-3)

    print("KERNEL_OK")
</pallas_src>

<mosaic_0001>
module attributes {stable_mosaic.version = 11 : i64} {
  func.func @_classwise_ece_kernel(%arg0: i32, %arg1: i32, %arg2: memref<8x256xf32, #tpu.memory_space<vmem>>, %arg3: memref<1x256xi32, #tpu.memory_space<vmem>>, %arg4: memref<360x128xf32, #tpu.memory_space<vmem>>) attributes {dimension_semantics = [#tpu.dimension_semantics<parallel>, #tpu.dimension_semantics<arbitrary>], iteration_bounds = array<i64: 2, 1>, scalar_prefetch = 0 : i64, scratch_operands = 0 : i64, tpu.core_type = #tpu.core_type<tc>, window_params = [{transform_indices = @transform_0, window_bounds = array<i64: 8, 256>}, {transform_indices = @transform_1, window_bounds = array<i64: 1, 256>}, {transform_indices = @transform_2, window_bounds = array<i64: 360, 128>}]} {
    %c0_i32 = arith.constant 0 : i32
    %0 = arith.cmpi eq, %arg1, %c0_i32 : i32
    %1 = arith.extui %0 : i1 to i32
    %c0_i32_0 = arith.constant 0 : i32
    %2 = arith.cmpi ne, %1, %c0_i32_0 : i32
    scf.if %2 {
      %cst_267 = arith.constant 0.000000e+00 : f32
      %640 = vector.broadcast %cst_267 : f32 to vector<360x128xf32>
      %c0_268 = arith.constant 0 : index
      %c0_269 = arith.constant 0 : index
      %641 = vector.load %arg4[%c0_268, %c0_269] : memref<360x128xf32, #tpu.memory_space<vmem>>, vector<360x128xf32>
      tpu.vector_store %arg4[%c0_268, %c0_269], %640 {strides = array<i32>} : memref<360x128xf32, #tpu.memory_space<vmem>>, vector<360x128xf32>,
    } else {
    }
    %c0 = arith.constant 0 : index
    %c0_1 = arith.constant 0 : index
    %3 = vector.load %arg2[%c0, %c0_1] : memref<8x256xf32, #tpu.memory_space<vmem>>, vector<8x256xf32>
    %c0_2 = arith.constant 0 : index
    %c0_3 = arith.constant 0 : index
    %4 = vector.load %arg3[%c0_2, %c0_3] : memref<1x256xi32, #tpu.memory_space<vmem>>, vector<1x256xi32>
    %cst = arith.constant dense<0xFF800000> : vector<256xf32>
    %5 = vector.multi_reduction <maximumf>, %3, %cst [0] : vector<8x256xf32> to vector<256xf32>
    %6 = vector.shape_cast %5 : vector<256xf32> to vector<1x256xf32>
    %7 = vector.broadcast %6 : vector<1x256xf32> to vector<8x256xf32>
    %8 = arith.subf %3, %7 : vector<8x256xf32>
    %9 = math.exp %8 : vector<8x256xf32>
    %cst_4 = arith.constant dense<0.000000e+00> : vector<256xf32>
    %10 = vector.multi_reduction <add>, %9, %cst_4 [0] : vector<8x256xf32> to vector<256xf32>
    %11 = vector.shape_cast %10 : vector<256xf32> to vector<1x256xf32>
    %12 = tpu.reciprocal %11 {approx = true} : vector<1x256xf32> -> vector<1x256xf32>
    %13 = vector.broadcast %12 : vector<1x256xf32> to vector<8x256xf32>
    %14 = arith.mulf %9, %13 : vector<8x256xf32>
    %15 = tpu.iota {dimensions = array<i32: 1>} : vector<1x256xi32>
    %c1_i32 = arith.constant 1 : i32
    %16 = arith.muli %arg0, %c1_i32 : i32
    %17 = arith.addi %16, %arg1 : i32
    %c256_i32 = arith.constant 256 : i32
    %18 = arith.muli %17, %c256_i32 : i32
    %19 = vector.broadcast %18 : i32 to vector<1x256xi32>
    %20 = arith.addi %19, %15 : vector<1x256xi32>
    %c256_i32_5 = arith.constant 256 : i32
    %21 = vector.broadcast %c256_i32_5 : i32 to vector<1x256xi32>
    %22 = arith.cmpi slt, %20, %21 : vector<1x256xi32>
    %cst_6 = arith.constant 1.500000e+01 : f32
    %23 = vector.broadcast %cst_6 : f32 to vector<8x256xf32>
    %24 = arith.mulf %14, %23 : vector<8x256xf32>
    %25 = math.ceil %24 : vector<8x256xf32>
    %26 = arith.fptosi %25 : vector<8x256xf32> to vector<8x256xi32>
    %c1_i32_7 = arith.constant 1 : i32
    %27 = vector.broadcast %c1_i32_7 : i32 to vector<8x256xi32>
    %28 = arith.subi %26, %27 : vector<8x256xi32>
    %c14_i32 = arith.constant 14 : i32
    %29 = vector.broadcast %c14_i32 : i32 to vector<8x256xi32>
    %30 = arith.minsi %28, %29 : vector<8x256xi32>
    %c-1_i32 = arith.constant -1 : i32
    %31 = vector.shape_cast %22 : vector<1x256xi1> to vector<1x256xi1>
    %32 = vector.broadcast %31 : vector<1x256xi1> to vector<8x256xi1>
    %33 = vector.broadcast %c-1_i32 : i32 to vector<8x256xi32>
    %34 = arith.select %32, %30, %33 : vector<8x256xi1>, vector<8x256xi32>
    %35 = tpu.iota {dimensions = array<i32: 0>} : vector<8x256xi32>
    %36 = vector.broadcast %4 : vector<1x256xi32> to vector<8x256xi32>
    %37 = arith.cmpi eq, %35, %36 : vector<8x256xi32>
    %38 = arith.extui %37 : vector<8x256xi1> to vector<8x256xi32>
    %39 = arith.sitofp %38 : vector<8x256xi32> to vector<8x256xf32>
    %cst_8 = arith.constant 0.000000e+00 : f32
    %40 = vector.broadcast %cst_8 : f32 to vector<8x128xf32>
    %cst_9 = arith.constant 0.000000e+00 : f32
    %41 = vector.broadcast %cst_9 : f32 to vector<8x128xf32>
    %cst_10 = arith.constant 0.000000e+00 : f32
    %42 = vector.broadcast %cst_10 : f32 to vector<8x128xf32>
    %43 = vector.extract_strided_slice %34 {offsets = [0, 0], sizes = [8, 128], strides = [1, 1]} : vector<8x256xi32> to vector<8x128xi32>
    %c0_i32_11 = arith.constant 0 : i32
    %44 = vector.broadcast %c0_i32_11 : i32 to vector<8x128xi32>
    %45 = arith.cmpi eq, %43, %44 : vector<8x128xi32>
    %46 = arith.extui %45 : vector<8x128xi1> to vector<8x128xi32>
    %47 = arith.sitofp %46 : vector<8x128xi32> to vector<8x128xf32>
    %48 = arith.addf %40, %47 : vector<8x128xf32>
    %49 = vector.extract_strided_slice %14 {offsets = [0, 0], sizes = [8, 128], strides = [1, 1]} : vector<8x256xf32> to vector<8x128xf32>
    %cst_12 = arith.constant 0.000000e+00 : f32
    %50 = vector.broadcast %cst_12 : f32 to vector<8x128xf32>
    %51 = arith.select %45, %49, %50 : vector<8x128xi1>, vector<8x128xf32>
    %52 = arith.addf %41, %51 : vector<8x128xf32>
    %53 = vector.extract_strided_slice %39 {offsets = [0, 0], sizes = [8, 128], strides = [1, 1]} : vector<8x256xf32> to vector<8x128xf32>
    %cst_13 = arith.constant 0.000000e+00 : f32
    %54 = vector.broadcast %cst_13 : f32 to vector<8x128xf32>
    %55 = arith.select %45, %53, %54 : vector<8x128xi1>, vector<8x128xf32>
    %56 = arith.addf %42, %55 : vector<8x128xf32>
    %57 = vector.extract_strided_slice %34 {offsets = [0, 128], sizes = [8, 128], strides = [1, 1]} : vector<8x256xi32> to vector<8x128xi32>
    %c0_i32_14 = arith.constant 0 : i32
    %58 = vector.broadcast %c0_i32_14 : i32 to vector<8x128xi32>
    %59 = arith.cmpi eq, %57, %58 : vector<8x128xi32>
    %60 = arith.extui %59 : vector<8x128xi1> to vector<8x128xi32>
    %61 = arith.sitofp %60 : vector<8x128xi32> to vector<8x128xf32>
    %62 = arith.addf %48, %61 : vector<8x128xf32>
    %63 = vector.extract_strided_slice %14 {offsets = [0, 128], sizes = [8, 128], strides = [1, 1]} : vector<8x256xf32> to vector<8x128xf32>
    %cst_15 = arith.constant 0.000000e+00 : f32
    %64 = vector.broadcast %cst_15 : f32 to vector<8x128xf32>
    %65 = arith.select %59, %63, %64 : vector<8x128xi1>, vector<8x128xf32>
    %66 = arith.addf %52, %65 : vector<8x128xf32>
    %67 = vector.extract_strided_slice %39 {offsets = [0, 128], sizes = [8, 128], strides = [1, 1]} : vector<8x256xf32> to vector<8x128xf32>
    %cst_16 = arith.constant 0.000000e+00 : f32
    %68 = vector.broadcast %cst_16 : f32 to vector<8x128xf32>
    %69 = arith.select %59, %67, %68 : vector<8x128xi1>, vector<8x128xf32>
    %70 = arith.addf %56, %69 : vector<8x128xf32>
    %c0_17 = arith.constant 0 : index
    %c0_18 = arith.constant 0 : index
    %71 = vector.load %arg4[%c0_17, %c0_18] : memref<360x128xf32, #tpu.memory_space<vmem>>, vector<8x128xf32>
    %72 = arith.addf %71, %62 : vector<8x128xf32>
    %c0_19 = arith.constant 0 : index
    %c0_20 = arith.constant 0 : index
    %73 = vector.load %arg4[%c0_19, %c0_20] : memref<360x128xf32, #tpu.memory_space<vmem>>, vector<8x128xf32>
    tpu.vector_store %arg4[%c0_19, %c0_20], %72 {strides = array<i32>} : memref<360x128xf32, #tpu.memory_space<vmem>>, vector<8x128xf32>,
    %c8 = arith.constant 8 : index
    %c0_21 = arith.constant 0 : index
    %74 = vector.load %arg4[%c8, %c0_21] : memref<360x128xf32, #tpu.memory_space<vmem>>, vector<8x128xf32>
    %75 = arith.addf %74, %66 : vector<8x128xf32>
    %c8_22 = arith.constant 8 : index
    %c0_23 = arith.constant 0 : index
    %76 = vector.load %arg4[%c8_22, %c0_23] : memref<360x128xf32, #tpu.memory_space<vmem>>, vector<8x128xf32>
    tpu.vector_store %arg4[%c8_22, %c0_23], %75 {strides = array<i32>} : memref<360x128xf32, #tpu.memory_space<vmem>>, vector<8x128xf32>,
    %c16 = arith.constant 16 : index
    %c0_24 = arith.constant 0 : index
    %77 = vector.load %arg4[%c16, %c0_24] : memref<360x128xf32, #tpu.memory_space<vmem>>, vector<8x128xf32>
    %78 = arith.addf %77, %70 : vector<8x128xf32>
    %c16_25 = arith.constant 16 : index
    %c0_26 = arith.constant 0 : index
    %79 = vector.load %arg4[%c16_25, %c0_26] : memref<360x128xf32, #tpu.memory_space<vmem>>, vector<8x128xf32>
    tpu.vector_store %arg4[%c16_25, %c0_26], %78 {strides = array<i32>} : memref<360x128xf32, #tpu.memory_space<vmem>>, vector<8x128xf32>,
    %cst_27 = arith.constant 0.000000e+00 : f32
    %80 = vector.broadcast %cst_27 : f32 to vector<8x128xf32>
    %cst_28 = arith.constant 0.000000e+00 : f32
    %81 = vector.broadcast %cst_28 : f32 to vector<8x128xf32>
    %cst_29 = arith.constant 0.000000e+00 : f32
    %82 = vector.broadcast %cst_29 : f32 to vector<8x128xf32>
    %83 = vector.extract_strided_slice %34 {offsets = [0, 0], sizes = [8, 128], strides = [1, 1]} : vector<8x256xi32> to vector<8x128xi32>
    %c1_i32_30 = arith.constant 1 : i32
    %84 = vector.broadcast %c1_i32_30 : i32 to vector<8x128xi32>
    %85 = arith.cmpi eq, %83, %84 : vector<8x128xi32>
    %86 = arith.extui %85 : vector<8x128xi1> to vector<8x128xi32>
    %87 = arith.sitofp %86 : vector<8x128xi32> to vector<8x128xf32>
    %88 = arith.addf %80, %87 : vector<8x128xf32>
    %89 = vector.extract_strided_slice %14 {offsets = [0, 0], sizes = [8, 128], strides = [1, 1]} : vector<8x256xf32> to vector<8x128xf32>
    %cst_31 = arith.constant 0.000000e+00 : f32
    %90 = vector.broadcast %cst_31 : f32 to vector<8x128xf32>
    %91 = arith.select %85, %89, %90 : vector<8x128xi1>, vector<8x128xf32>
    %92 = arith.addf %81, %91 : vector<8x128xf32>
    %93 = vector.extract_strided_slice %39 {offsets = [0, 0], sizes = [8, 128], strides = [1, 1]} : vector<8x256xf32> to vector<8x128xf32>
    %cst_32 = arith.constant 0.000000e+00 : f32
    %94 = vector.broadcast %cst_32 : f32 to vector<8x128xf32>
    %95 = arith.select %85, %93, %94 : vector<8x128xi1>, vector<8x128xf32>
    %96 = arith.addf %82, %95 : vector<8x128xf32>
    %97 = vector.extract_strided_slice %34 {offsets = [0, 128], sizes = [8, 128], strides = [1, 1]} : vector<8x256xi32> to vector<8x128xi32>
    %c1_i32_33 = arith.constant 1 : i32
    %98 = vector.broadcast %c1_i32_33 : i32 to vector<8x128xi32>
    %99 = arith.cmpi eq, %97, %98 : vector<8x128xi32>
    %100 = arith.extui %99 : vector<8x128xi1> to vector<8x128xi32>
    %101 = arith.sitofp %100 : vector<8x128xi32> to vector<8x128xf32>
    %102 = arith.addf %88, %101 : vector<8x128xf32>
    %103 = vector.extract_strided_slice %14 {offsets = [0, 128], sizes = [8, 128], strides = [1, 1]} : vector<8x256xf32> to vector<8x128xf32>
    %cst_34 = arith.constant 0.000000e+00 : f32
    %104 = vector.broadcast %cst_34 : f32 to vector<8x128xf32>
    %105 = arith.select %99, %103, %104 : vector<8x128xi1>, vector<8x128xf32>
    %106 = arith.addf %92, %105 : vector<8x128xf32>
    %107 = vector.extract_strided_slice %39 {offsets = [0, 128], sizes = [8, 128], strides = [1, 1]} : vector<8x256xf32> to vector<8x128xf32>
    %cst_35 = arith.constant 0.000000e+00 : f32
    %108 = vector.broadcast %cst_35 : f32 to vector<8x128xf32>
    %109 = arith.select %99, %107, %108 : vector<8x128xi1>, vector<8x128xf32>
    %110 = arith.addf %96, %109 : vector<8x128xf32>
    %c24 = arith.constant 24 : index
    %c0_36 = arith.constant 0 : index
    %111 = vector.load %arg4[%c24, %c0_36] : memref<360x128xf32, #tpu.memory_space<vmem>>, vector<8x128xf32>
    %112 = arith.addf %111, %102 : vector<8x128xf32>
    %c24_37 = arith.constant 24 : index
    %c0_38 = arith.constant 0 : index
    %113 = vector.load %arg4[%c24_37, %c0_38] : memref<360x128xf32, #tpu.memory_space<vmem>>, vector<8x128xf32>
    tpu.vector_store %arg4[%c24_37, %c0_38], %112 {strides = array<i32>} : memref<360x128xf32, #tpu.memory_space<vmem>>, vector<8x128xf32>,
    %c32 = arith.constant 32 : index
    %c0_39 = arith.constant 0 : index
    %114 = vector.load %arg4[%c32, %c0_39] : memref<360x128xf32, #tpu.memory_space<vmem>>, vector<8x128xf32>
    %115 = arith.addf %114, %106 : vector<8x128xf32>
    %c32_40 = arith.constant 32 : index
    %c0_41 = arith.constant 0 : index
    %116 = vector.load %arg4[%c32_40, %c0_41] : memref<360x128xf32, #tpu.memory_space<vmem>>, vector<8x128xf32>
    tpu.vector_store %arg4[%c32_40, %c0_41], %115 {strides = array<i32>} : memref<360x128xf32, #tpu.memory_space<vmem>>, vector<8x128xf32>,
    %c40 = arith.constant 40 : index
    %c0_42 = arith.constant 0 : index
    %117 = vector.load %arg4[%c40, %c0_42] : memref<360x128xf32, #tpu.memory_space<vmem>>, vector<8x128xf32>
    %118 = arith.addf %117, %110 : vector<8x128xf32>
    %c40_43 = arith.constant 40 : index
    %c0_44 = arith.constant 0 : index
    %119 = vector.load %arg4[%c40_43, %c0_44] : memref<360x128xf32, #tpu.memory_space<vmem>>, vector<8x128xf32>
    tpu.vector_store %arg4[%c40_43, %c0_44], %118 {strides = array<i32>} : memref<360x128xf32, #tpu.memory_space<vmem>>, vector<8x128xf32>,
    %cst_45 = arith.constant 0.000000e+00 : f32
    %120 = vector.broadcast %cst_45 : f32 to vector<8x128xf32>
    %cst_46 = arith.constant 0.000000e+00 : f32
    %121 = vector.broadcast %cst_46 : f32 to vector<8x128xf32>
    %cst_47 = arith.constant 0.000000e+00 : f32
    %122 = vector.broadcast %cst_47 : f32 to vector<8x128xf32>
    %123 = vector.extract_strided_slice %34 {offsets = [0, 0], sizes = [8, 128], strides = [1, 1]} : vector<8x256xi32> to vector<8x128xi32>
    %c2_i32 = arith.constant 2 : i32
    %124 = vector.broadcast %c2_i32 : i32 to vector<8x128xi32>
    %125 = arith.cmpi eq, %123, %124 : vector<8x128xi32>
    %126 = arith.extui %125 : vector<8x128xi1> to vector<8x128xi32>
    %127 = arith.sitofp %126 : vector<8x128xi32> to vector<8x128xf32>
    %128 = arith.addf %120, %127 : vector<8x128xf32>
    %129 = vector.extract_strided_slice %14 {offsets = [0, 0], sizes = [8, 128], strides = [1, 1]} : vector<8x256xf32> to vector<8x128xf32>
    %cst_48 = arith.constant 0.000000e+00 : f32
    %130 = vector.broadcast %cst_48 : f32 to vector<8x128xf32>
    %131 = arith.select %125, %129, %130 : vector<8x128xi1>, vector<8x128xf32>
    %132 = arith.addf %121, %131 : vector<8x128xf32>
    %133 = vector.extract_strided_slice %39 {offsets = [0, 0], sizes = [8, 128], strides = [1, 1]} : vector<8x256xf32> to vector<8x128xf32>
    %cst_49 = arith.constant 0.000000e+00 : f32
    %134 = vector.broadcast %cst_49 : f32 to vector<8x128xf32>
    %135 = arith.select %125, %133, %134 : vector<8x128xi1>, vector<8x128xf32>
    %136 = arith.addf %122, %135 : vector<8x128xf32>
    %137 = vector.extract_strided_slice %34 {offsets = [0, 128], sizes = [8, 128], strides = [1, 1]} : vector<8x256xi32> to vector<8x128xi32>
    %c2_i32_50 = arith.constant 2 : i32
    %138 = vector.broadcast %c2_i32_50 : i32 to vector<8x128xi32>
    %139 = arith.cmpi eq, %137, %138 : vector<8x128xi32>
    %140 = arith.extui %139 : vector<8x128xi1> to vector<8x128xi32>
    %141 = arith.sitofp %140 : vector<8x128xi32> to vector<8x128xf32>
    %142 = arith.addf %128, %141 : vector<8x128xf32>
    %143 = vector.extract_strided_slice %14 {offsets = [0, 128], sizes = [8, 128], strides = [1, 1]} : vector<8x256xf32> to vector<8x128xf32>
    %cst_51 = arith.constant 0.000000e+00 : f32
    %144 = vector.broadcast %cst_51 : f32 to vector<8x128xf32>
    %145 = arith.select %139, %143, %144 : vector<8x128xi1>, vector<8x128xf32>
    %146 = arith.addf %132, %145 : vector<8x128xf32>
    %147 = vector.extract_strided_slice %39 {offsets = [0, 128], sizes = [8, 128], strides = [1, 1]} : vector<8x256xf32> to vector<8x128xf32>
    %cst_52 = arith.constant 0.000000e+00 : f32
    %148 = vector.broadcast %cst_52 : f32 to vector<8x128xf32>
    %149 = arith.select %139, %147, %148 : vector<8x128xi1>, vector<8x128xf32>
    %150 = arith.addf %136, %149 : vector<8x128xf32>
    %c48 = arith.constant 48 : index
    %c0_53 = arith.constant 0 : index
    %151 = vector.load %arg4[%c48, %c0_53] : memref<360x128xf32, #tpu.memory_space<vmem>>, vector<8x128xf32>
    %152 = arith.addf %151, %142 : vector<8x128xf32>
    %c48_54 = arith.constant 48 : index
    %c0_55 = arith.constant 0 : index
    %153 = vector.load %arg4[%c48_54, %c0_55] : memref<360x128xf32, #tpu.memory_space<vmem>>, vector<8x128xf32>
    tpu.vector_store %arg4[%c48_54, %c0_55], %152 {strides = array<i32>} : memref<360x128xf32, #tpu.memory_space<vmem>>, vector<8x128xf32>,
    %c56 = arith.constant 56 : index
    %c0_56 = arith.constant 0 : index
    %154 = vector.load %arg4[%c56, %c0_56] : memref<360x128xf32, #tpu.memory_space<vmem>>, vector<8x128xf32>
    %155 = arith.addf %154, %146 : vector<8x128xf32>
    %c56_57 = arith.constant 56 : index
    %c0_58 = arith.constant 0 : index
    %156 = vector.load %arg4[%c56_57, %c0_58] : memref<360x128xf32, #tpu.memory_space<vmem>>, vector<8x128xf32>
    tpu.vector_store %arg4[%c56_57, %c0_58], %155 {strides = array<i32>} : memref<360x128xf32, #tpu.memory_space<vmem>>, vector<8x128xf32>,
    %c64 = arith.constant 64 : index
    %c0_59 = arith.constant 0 : index
    %157 = vector.load %arg4[%c64, %c0_59] : memref<360x128xf32, #tpu.memory_space<vmem>>, vector<8x128xf32>
    %158 = arith.addf %157, %150 : vector<8x128xf32>
    %c64_60 = arith.constant 64 : index
    %c0_61 = arith.constant 0 : index
    %159 = vector.load %arg4[%c64_60, %c0_61] : memref<360x128xf32, #tpu.memory_space<vmem>>, vector<8x128xf32>
    tpu.vector_store %arg4[%c64_60, %c0_61], %158 {strides = array<i32>} : memref<360x128xf32, #tpu.memory_space<vmem>>, vector<8x128xf32>,
    %cst_62 = arith.constant 0.000000e+00 : f32
    %160 = vector.broadcast %cst_62 : f32 to vector<8x128xf32>
    %cst_63 = arith.constant 0.000000e+00 : f32
    %161 = vector.broadcast %cst_63 : f32 to vector<8x128xf32>
    %cst_64 = arith.constant 0.000000e+00 : f32
    %162 = vector.broadcast %cst_64 : f32 to vector<8x128xf32>
    %163 = vector.extract_strided_slice %34 {offsets = [0, 0], sizes = [8, 128], strides = [1, 1]} : vector<8x256xi32> to vector<8x128xi32>
    %c3_i32 = arith.constant 3 : i32
    %164 = vector.broadcast %c3_i32 : i32 to vector<8x128xi32>
    %165 = arith.cmpi eq, %163, %164 : vector<8x128xi32>
    %166 = arith.extui %165 : vector<8x128xi1> to vector<8x128xi32>
    %167 = arith.sitofp %166 : vector<8x128xi32> to vector<8x128xf32>
    %168 = arith.addf %160, %167 : vector<8x128xf32>
    %169 = vector.extract_strided_slice %14 {offsets = [0, 0], sizes = [8, 128], strides = [1, 1]} : vector<8x256xf32> to vector<8x128xf32>
    %cst_65 = arith.constant 0.000000e+00 : f32
    %170 = vector.broadcast %cst_65 : f32 to vector<8x128xf32>
    %171 = arith.select %165, %169, %170 : vector<8x128xi1>, vector<8x128xf32>
    %172 = arith.addf %161, %171 : vector<8x128xf32>
    %173 = vector.extract_strided_slice %39 {offsets = [0, 0], sizes = [8, 128], strides = [1, 1]} : vector<8x256xf32> to vector<8x128xf32>
    %cst_66 = arith.constant 0.000000e+00 : f32
    %174 = vector.broadcast %cst_66 : f32 to vector<8x128xf32>
    %175 = arith.select %165, %173, %174 : vector<8x128xi1>, vector<8x128xf32>
    %176 = arith.addf %162, %175 : vector<8x128xf32>
    %177 = vector.extract_strided_slice %34 {offsets = [0, 128], sizes = [8, 128], strides = [1, 1]} : vector<8x256xi32> to vector<8x128xi32>
    %c3_i32_67 = arith.constant 3 : i32
    %178 = vector.broadcast %c3_i32_67 : i32 to vector<8x128xi32>
    %179 = arith.cmpi eq, %177, %178 : vector<8x128xi32>
    %180 = arith.extui %179 : vector<8x128xi1> to vector<8x128xi32>
    %181 = arith.sitofp %180 : vector<8x128xi32> to vector<8x128xf32>
    %182 = arith.addf %168, %181 : vector<8x128xf32>
    %183 = vector.extract_strided_slice %14 {offsets = [0, 128], sizes = [8, 128], strides = [1, 1]} : vector<8x256xf32> to vector<8x128xf32>
    %cst_68 = arith.constant 0.000000e+00 : f32
    %184 = vector.broadcast %cst_68 : f32 to vector<8x128xf32>
    %185 = arith.select %179, %183, %184 : vector<8x128xi1>, vector<8x128xf32>
    %186 = arith.addf %172, %185 : vector<8x128xf32>
    %187 = vector.extract_strided_slice %39 {offsets = [0, 128], sizes = [8, 128], strides = [1, 1]} : vector<8x256xf32> to vector<8x128xf32>
    %cst_69 = arith.constant 0.000000e+00 : f32
    %188 = vector.broadcast %cst_69 : f32 to vector<8x128xf32>
    %189 = arith.select %179, %187, %188 : vector<8x128xi1>, vector<8x128xf32>
    %190 = arith.addf %176, %189 : vector<8x128xf32>
    %c72 = arith.constant 72 : index
    %c0_70 = arith.constant 0 : index
    %191 = vector.load %arg4[%c72, %c0_70] : memref<360x128xf32, #tpu.memory_space<vmem>>, vector<8x128xf32>
    %192 = arith.addf %191, %182 : vector<8x128xf32>
    %c72_71 = arith.constant 72 : index
    %c0_72 = arith.constant 0 : index
    %193 = vector.load %arg4[%c72_71, %c0_72] : memref<360x128xf32, #tpu.memory_space<vmem>>, vector<8x128xf32>
    tpu.vector_store %arg4[%c72_71, %c0_72], %192 {strides = array<i32>} : memref<360x128xf32, #tpu.memory_space<vmem>>, vector<8x128xf32>,
    %c80 = arith.constant 80 : index
    %c0_73 = arith.constant 0 : index
    %194 = vector.load %arg4[%c80, %c0_73] : memref<360x128xf32, #tpu.memory_space<vmem>>, vector<8x128xf32>
    %195 = arith.addf %194, %186 : vector<8x128xf32>
    %c80_74 = arith.constant 80 : index
    %c0_75 = arith.constant 0 : index
    %196 = vector.load %arg4[%c80_74, %c0_75] : memref<360x128xf32, #tpu.memory_space<vmem>>, vector<8x128xf32>
    tpu.vector_store %arg4[%c80_74, %c0_75], %195 {strides = array<i32>} : memref<360x128xf32, #tpu.memory_space<vmem>>, vector<8x128xf32>,
    %c88 = arith.constant 88 : index
    %c0_76 = arith.constant 0 : index
    %197 = vector.load %arg4[%c88, %c0_76] : memref<360x128xf32, #tpu.memory_space<vmem>>, vector<8x128xf32>
    %198 = arith.addf %197, %190 : vector<8x128xf32>
    %c88_77 = arith.constant 88 : index
    %c0_78 = arith.constant 0 : index
    %199 = vector.load %arg4[%c88_77, %c0_78] : memref<360x128xf32, #tpu.memory_space<vmem>>, vector<8x128xf32>
    tpu.vector_store %arg4[%c88_77, %c0_78], %198 {strides = array<i32>} : memref<360x128xf32, #tpu.memory_space<vmem>>, vector<8x128xf32>,
    %cst_79 = arith.constant 0.000000e+00 : f32
    %200 = vector.broadcast %cst_79 : f32 to vector<8x128xf32>
    %cst_80 = arith.constant 0.000000e+00 : f32
    %201 = vector.broadcast %cst_80 : f32 to vector<8x128xf32>
    %cst_81 = arith.constant 0.000000e+00 : f32
    %202 = vector.broadcast %cst_81 : f32 to vector<8x128xf32>
    %203 = vector.extract_strided_slice %34 {offsets = [0, 0], sizes = [8, 128], strides = [1, 1]} : vector<8x256xi32> to vector<8x128xi32>
    %c4_i32 = arith.constant 4 : i32
    %204 = vector.broadcast %c4_i32 : i32 to vector<8x128xi32>
    %205 = arith.cmpi eq, %203, %204 : vector<8x128xi32>
    %206 = arith.extui %205 : vector<8x128xi1> to vector<8x128xi32>
    %207 = arith.sitofp %206 : vector<8x128xi32> to vector<8x128xf32>
    %208 = arith.addf %200, %207 : vector<8x128xf32>
    %209 = vector.extract_strided_slice %14 {offsets = [0, 0], sizes = [8, 128], strides = [1, 1]} : vector<8x256xf32> to vector<8x128xf32>
    %cst_82 = arith.constant 0.000000e+00 : f32
    %210 = vector.broadcast %cst_82 : f32 to vector<8x128xf32>
    %211 = arith.select %205, %209, %210 : vector<8x128xi1>, vector<8x128xf32>
    %212 = arith.addf %201, %211 : vector<8x128xf32>
    %213 = vector.extract_strided_slice %39 {offsets = [0, 0], sizes = [8, 128], strides = [1, 1]} : vector<8x256xf32> to vector<8x128xf32>
    %cst_83 = arith.constant 0.000000e+00 : f32
    %214 = vector.broadcast %cst_83 : f32 to vector<8x128xf32>
    %215 = arith.select %205, %213, %214 : vector<8x128xi1>, vector<8x128xf32>
    %216 = arith.addf %202, %215 : vector<8x128xf32>
    %217 = vector.extract_strided_slice %34 {offsets = [0, 128], sizes = [8, 128], strides = [1, 1]} : vector<8x256xi32> to vector<8x128xi32>
    %c4_i32_84 = arith.constant 4 : i32
    %218 = vector.broadcast %c4_i32_84 : i32 to vector<8x128xi32>
    %219 = arith.cmpi eq, %217, %218 : vector<8x128xi32>
    %220 = arith.extui %219 : vector<8x128xi1> to vector<8x128xi32>
    %221 = arith.sitofp %220 : vector<8x128xi32> to vector<8x128xf32>
    %222 = arith.addf %208, %221 : vector<8x128xf32>
    %223 = vector.extract_strided_slice %14 {offsets = [0, 128], sizes = [8, 128], strides = [1, 1]} : vector<8x256xf32> to vector<8x128xf32>
    %cst_85 = arith.constant 0.000000e+00 : f32
    %224 = vector.broadcast %cst_85 : f32 to vector<8x128xf32>
    %225 = arith.select %219, %223, %224 : vector<8x128xi1>, vector<8x128xf32>
    %226 = arith.addf %212, %225 : vector<8x128xf32>
    %227 = vector.extract_strided_slice %39 {offsets = [0, 128], sizes = [8, 128], strides = [1, 1]} : vector<8x256xf32> to vector<8x128xf32>
    %cst_86 = arith.constant 0.000000e+00 : f32
    %228 = vector.broadcast %cst_86 : f32 to vector<8x128xf32>
    %229 = arith.select %219, %227, %228 : vector<8x128xi1>, vector<8x128xf32>
    %230 = arith.addf %216, %229 : vector<8x128xf32>
    %c96 = arith.constant 96 : index
    %c0_87 = arith.constant 0 : index
    %231 = vector.load %arg4[%c96, %c0_87] : memref<360x128xf32, #tpu.memory_space<vmem>>, vector<8x128xf32>
    %232 = arith.addf %231, %222 : vector<8x128xf32>
    %c96_88 = arith.constant 96 : index
    %c0_89 = arith.constant 0 : index
    %233 = vector.load %arg4[%c96_88, %c0_89] : memref<360x128xf32, #tpu.memory_space<vmem>>, vector<8x128xf32>
    tpu.vector_store %arg4[%c96_88, %c0_89], %232 {strides = array<i32>} : memref<360x128xf32, #tpu.memory_space<vmem>>, vector<8x128xf32>,
    %c104 = arith.constant 104 : index
    %c0_90 = arith.constant 0 : index
    %234 = vector.load %arg4[%c104, %c0_90] : memref<360x128xf32, #tpu.memory_space<vmem>>, vector<8x128xf32>
    %235 = arith.addf %234, %226 : vector<8x128xf32>
    %c104_91 = arith.constant 104 : index
    %c0_92 = arith.constant 0 : index
    %236 = vector.load %arg4[%c104_91, %c0_92] : memref<360x128xf32, #tpu.memory_space<vmem>>, vector<8x128xf32>
    tpu.vector_store %arg4[%c104_91, %c0_92], %235 {strides = array<i32>} : memref<360x128xf32, #tpu.memory_space<vmem>>, vector<8x128xf32>,
    %c112 = arith.constant 112 : index
    %c0_93 = arith.constant 0 : index
    %237 = vector.load %arg4[%c112, %c0_93] : memref<360x128xf32, #tpu.memory_space<vmem>>, vector<8x128xf32>
    %238 = arith.addf %237, %230 : vector<8x128xf32>
    %c112_94 = arith.constant 112 : index
    %c0_95 = arith.constant 0 : index
    %239 = vector.load %arg4[%c112_94, %c0_95] : memref<360x128xf32, #tpu.memory_space<vmem>>, vector<8x128xf32>
    tpu.vector_store %arg4[%c112_94, %c0_95], %238 {strides = array<i32>} : memref<360x128xf32, #tpu.memory_space<vmem>>, vector<8x128xf32>,
    %cst_96 = arith.constant 0.000000e+00 : f32
    %240 = vector.broadcast %cst_96 : f32 to vector<8x128xf32>
    %cst_97 = arith.constant 0.000000e+00 : f32
    %241 = vector.broadcast %cst_97 : f32 to vector<8x128xf32>
    %cst_98 = arith.constant 0.000000e+00 : f32
    %242 = vector.broadcast %cst_98 : f32 to vector<8x128xf32>
    %243 = vector.extract_strided_slice %34 {offsets = [0, 0], sizes = [8, 128], strides = [1, 1]} : vector<8x256xi32> to vector<8x128xi32>
    %c5_i32 = arith.constant 5 : i32
    %244 = vector.broadcast %c5_i32 : i32 to vector<8x128xi32>
    %245 = arith.cmpi eq, %243, %244 : vector<8x128xi32>
    %246 = arith.extui %245 : vector<8x128xi1> to vector<8x128xi32>
    %247 = arith.sitofp %246 : vector<8x128xi32> to vector<8x128xf32>
    %248 = arith.addf %240, %247 : vector<8x128xf32>
    %249 = vector.extract_strided_slice %14 {offsets = [0, 0], sizes = [8, 128], strides = [1, 1]} : vector<8x256xf32> to vector<8x128xf32>
    %cst_99 = arith.constant 0.000000e+00 : f32
    %250 = vector.broadcast %cst_99 : f32 to vector<8x128xf32>
    %251 = arith.select %245, %249, %250 : vector<8x128xi1>, vector<8x128xf32>
    %252 = arith.addf %241, %251 : vector<8x128xf32>
    %253 = vector.extract_strided_slice %39 {offsets = [0, 0], sizes = [8, 128], strides = [1, 1]} : vector<8x256xf32> to vector<8x128xf32>
    %cst_100 = arith.constant 0.000000e+00 : f32
    %254 = vector.broadcast %cst_100 : f32 to vector<8x128xf32>
    %255 = arith.select %245, %253, %254 : vector<8x128xi1>, vector<8x128xf32>
    %256 = arith.addf %242, %255 : vector<8x128xf32>
    %257 = vector.extract_strided_slice %34 {offsets = [0, 128], sizes = [8, 128], strides = [1, 1]} : vector<8x256xi32> to vector<8x128xi32>
    %c5_i32_101 = arith.constant 5 : i32
    %258 = vector.broadcast %c5_i32_101 : i32 to vector<8x128xi32>
    %259 = arith.cmpi eq, %257, %258 : vector<8x128xi32>
    %260 = arith.extui %259 : vector<8x128xi1> to vector<8x128xi32>
    %261 = arith.sitofp %260 : vector<8x128xi32> to vector<8x128xf32>
    %262 = arith.addf %248, %261 : vector<8x128xf32>
    %263 = vector.extract_strided_slice %14 {offsets = [0, 128], sizes = [8, 128], strides = [1, 1]} : vector<8x256xf32> to vector<8x128xf32>
    %cst_102 = arith.constant 0.000000e+00 : f32
    %264 = vector.broadcast %cst_102 : f32 to vector<8x128xf32>
    %265 = arith.select %259, %263, %264 : vector<8x128xi1>, vector<8x128xf32>
    %266 = arith.addf %252, %265 : vector<8x128xf32>
    %267 = vector.extract_strided_slice %39 {offsets = [0, 128], sizes = [8, 128], strides = [1, 1]} : vector<8x256xf32> to vector<8x128xf32>
    %cst_103 = arith.constant 0.000000e+00 : f32
    %268 = vector.broadcast %cst_103 : f32 to vector<8x128xf32>
    %269 = arith.select %259, %267, %268 : vector<8x128xi1>, vector<8x128xf32>
    %270 = arith.addf %256, %269 : vector<8x128xf32>
    %c120 = arith.constant 120 : index
    %c0_104 = arith.constant 0 : index
    %271 = vector.load %arg4[%c120, %c0_104] : memref<360x128xf32, #tpu.memory_space<vmem>>, vector<8x128xf32>
    %272 = arith.addf %271, %262 : vector<8x128xf32>
    %c120_105 = arith.constant 120 : index
    %c0_106 = arith.constant 0 : index
    %273 = vector.load %arg4[%c120_105, %c0_106] : memref<360x128xf32, #tpu.memory_space<vmem>>, vector<8x128xf32>
    tpu.vector_store %arg4[%c120_105, %c0_106], %272 {strides = array<i32>} : memref<360x128xf32, #tpu.memory_space<vmem>>, vector<8x128xf32>,
    %c128 = arith.constant 128 : index
    %c0_107 = arith.constant 0 : index
    %274 = vector.load %arg4[%c128, %c0_107] : memref<360x128xf32, #tpu.memory_space<vmem>>, vector<8x128xf32>
    %275 = arith.addf %274, %266 : vector<8x128xf32>
    %c128_108 = arith.constant 128 : index
    %c0_109 = arith.constant 0 : index
    %276 = vector.load %arg4[%c128_108, %c0_109] : memref<360x128xf32, #tpu.memory_space<vmem>>, vector<8x128xf32>
    tpu.vector_store %arg4[%c128_108, %c0_109], %275 {strides = array<i32>} : memref<360x128xf32, #tpu.memory_space<vmem>>, vector<8x128xf32>,
    %c136 = arith.constant 136 : index
    %c0_110 = arith.constant 0 : index
    %277 = vector.load %arg4[%c136, %c0_110] : memref<360x128xf32, #tpu.memory_space<vmem>>, vector<8x128xf32>
    %278 = arith.addf %277, %270 : vector<8x128xf32>
    %c136_111 = arith.constant 136 : index
    %c0_112 = arith.constant 0 : index
    %279 = vector.load %arg4[%c136_111, %c0_112] : memref<360x128xf32, #tpu.memory_space<vmem>>, vector<8x128xf32>
    tpu.vector_store %arg4[%c136_111, %c0_112], %278 {strides = array<i32>} : memref<360x128xf32, #tpu.memory_space<vmem>>, vector<8x128xf32>,
    %cst_113 = arith.constant 0.000000e+00 : f32
    %280 = vector.broadcast %cst_113 : f32 to vector<8x128xf32>
    %cst_114 = arith.constant 0.000000e+00 : f32
    %281 = vector.broadcast %cst_114 : f32 to vector<8x128xf32>
    %cst_115 = arith.constant 0.000000e+00 : f32
    %282 = vector.broadcast %cst_115 : f32 to vector<8x128xf32>
    %283 = vector.extract_strided_slice %34 {offsets = [0, 0], sizes = [8, 128], strides = [1, 1]} : vector<8x256xi32> to vector<8x128xi32>
    %c6_i32 = arith.constant 6 : i32
    %284 = vector.broadcast %c6_i32 : i32 to vector<8x128xi32>
    %285 = arith.cmpi eq, %283, %284 : vector<8x128xi32>
    %286 = arith.extui %285 : vector<8x128xi1> to vector<8x128xi32>
    %287 = arith.sitofp %286 : vector<8x128xi32> to vector<8x128xf32>
    %288 = arith.addf %280, %287 : vector<8x128xf32>
    %289 = vector.extract_strided_slice %14 {offsets = [0, 0], sizes = [8, 128], strides = [1, 1]} : vector<8x256xf32> to vector<8x128xf32>
    %cst_116 = arith.constant 0.000000e+00 : f32
    %290 = vector.broadcast %cst_116 : f32 to vector<8x128xf32>
    %291 = arith.select %285, %289, %290 : vector<8x128xi1>, vector<8x128xf32>
    %292 = arith.addf %281, %291 : vector<8x128xf32>
    %293 = vector.extract_strided_slice %39 {offsets = [0, 0], sizes = [8, 128], strides = [1, 1]} : vector<8x256xf32> to vector<8x128xf32>
    %cst_117 = arith.constant 0.000000e+00 : f32
    %294 = vector.broadcast %cst_117 : f32 to vector<8x128xf32>
    %295 = arith.select %285, %293, %294 : vector<8x128xi1>, vector<8x128xf32>
    %296 = arith.addf %282, %295 : vector<8x128xf32>
    %297 = vector.extract_strided_slice %34 {offsets = [0, 128], sizes = [8, 128], strides = [1, 1]} : vector<8x256xi32> to vector<8x128xi32>
    %c6_i32_118 = arith.constant 6 : i32
    %298 = vector.broadcast %c6_i32_118 : i32 to vector<8x128xi32>
    %299 = arith.cmpi eq, %297, %298 : vector<8x128xi32>
    %300 = arith.extui %299 : vector<8x128xi1> to vector<8x128xi32>
    %301 = arith.sitofp %300 : vector<8x128xi32> to vector<8x128xf32>
    %302 = arith.addf %288, %301 : vector<8x128xf32>
    %303 = vector.extract_strided_slice %14 {offsets = [0, 128], sizes = [8, 128], strides = [1, 1]} : vector<8x256xf32> to vector<8x128xf32>
    %cst_119 = arith.constant 0.000000e+00 : f32
    %304 = vector.broadcast %cst_119 : f32 to vector<8x128xf32>
    %305 = arith.select %299, %303, %304 : vector<8x128xi1>, vector<8x128xf32>
    %306 = arith.addf %292, %305 : vector<8x128xf32>
    %307 = vector.extract_strided_slice %39 {offsets = [0, 128], sizes = [8, 128], strides = [1, 1]} : vector<8x256xf32> to vector<8x128xf32>
    %cst_120 = arith.constant 0.000000e+00 : f32
    %308 = vector.broadcast %cst_120 : f32 to vector<8x128xf32>
    %309 = arith.select %299, %307, %308 : vector<8x128xi1>, vector<8x128xf32>
    %310 = arith.addf %296, %309 : vector<8x128xf32>
    %c144 = arith.constant 144 : index
    %c0_121 = arith.constant 0 : index
    %311 = vector.load %arg4[%c144, %c0_121] : memref<360x128xf32, #tpu.memory_space<vmem>>, vector<8x128xf32>
    %312 = arith.addf %311, %302 : vector<8x128xf32>
    %c144_122 = arith.constant 144 : index
    %c0_123 = arith.constant 0 : index
    %313 = vector.load %arg4[%c144_122, %c0_123] : memref<360x128xf32, #tpu.memory_space<vmem>>, vector<8x128xf32>
    tpu.vector_store %arg4[%c144_122, %c0_123], %312 {strides = array<i32>} : memref<360x128xf32, #tpu.memory_space<vmem>>, vector<8x128xf32>,
    %c152 = arith.constant 152 : index
    %c0_124 = arith.constant 0 : index
    %314 = vector.load %arg4[%c152, %c0_124] : memref<360x128xf32, #tpu.memory_space<vmem>>, vector<8x128xf32>
    %315 = arith.addf %314, %306 : vector<8x128xf32>
    %c152_125 = arith.constant 152 : index
    %c0_126 = arith.constant 0 : index
    %316 = vector.load %arg4[%c152_125, %c0_126] : memref<360x128xf32, #tpu.memory_space<vmem>>, vector<8x128xf32>
    tpu.vector_store %arg4[%c152_125, %c0_126], %315 {strides = array<i32>} : memref<360x128xf32, #tpu.memory_space<vmem>>, vector<8x128xf32>,
    %c160 = arith.constant 160 : index
    %c0_127 = arith.constant 0 : index
    %317 = vector.load %arg4[%c160, %c0_127] : memref<360x128xf32, #tpu.memory_space<vmem>>, vector<8x128xf32>
    %318 = arith.addf %317, %310 : vector<8x128xf32>
    %c160_128 = arith.constant 160 : index
    %c0_129 = arith.constant 0 : index
    %319 = vector.load %arg4[%c160_128, %c0_129] : memref<360x128xf32, #tpu.memory_space<vmem>>, vector<8x128xf32>
    tpu.vector_store %arg4[%c160_128, %c0_129], %318 {strides = array<i32>} : memref<360x128xf32, #tpu.memory_space<vmem>>, vector<8x128xf32>,
    %cst_130 = arith.constant 0.000000e+00 : f32
    %320 = vector.broadcast %cst_130 : f32 to vector<8x128xf32>
    %cst_131 = arith.constant 0.000000e+00 : f32
    %321 = vector.broadcast %cst_131 : f32 to vector<8x128xf32>
    %cst_132 = arith.constant 0.000000e+00 : f32
    %322 = vector.broadcast %cst_132 : f32 to vector<8x128xf32>
    %323 = vector.extract_strided_slice %34 {offsets = [0, 0], sizes = [8, 128], strides = [1, 1]} : vector<8x256xi32> to vector<8x128xi32>
    %c7_i32 = arith.constant 7 : i32
    %324 = vector.broadcast %c7_i32 : i32 to vector<8x128xi32>
    %325 = arith.cmpi eq, %323, %324 : vector<8x128xi32>
    %326 = arith.extui %325 : vector<8x128xi1> to vector<8x128xi32>
    %327 = arith.sitofp %326 : vector<8x128xi32> to vector<8x128xf32>
    %328 = arith.addf %320, %327 : vector<8x128xf32>
    %329 = vector.extract_strided_slice %14 {offsets = [0, 0], sizes = [8, 128], strides = [1, 1]} : vector<8x256xf32> to vector<8x128xf32>
    %cst_133 = arith.constant 0.000000e+00 : f32
    %330 = vector.broadcast %cst_133 : f32 to vector<8x128xf32>
    %331 = arith.select %325, %329, %330 : vector<8x128xi1>, vector<8x128xf32>
    %332 = arith.addf %321, %331 : vector<8x128xf32>
    %333 = vector.extract_strided_slice %39 {offsets = [0, 0], sizes = [8, 128], strides = [1, 1]} : vector<8x256xf32> to vector<8x128xf32>
    %cst_134 = arith.constant 0.000000e+00 : f32
    %334 = vector.broadcast %cst_134 : f32 to vector<8x128xf32>
    %335 = arith.select %325, %333, %334 : vector<8x128xi1>, vector<8x128xf32>
    %336 = arith.addf %322, %335 : vector<8x128xf32>
    %337 = vector.extract_strided_slice %34 {offsets = [0, 128], sizes = [8, 128], strides = [1, 1]} : vector<8x256xi32> to vector<8x128xi32>
    %c7_i32_135 = arith.constant 7 : i32
    %338 = vector.broadcast %c7_i32_135 : i32 to vector<8x128xi32>
    %339 = arith.cmpi eq, %337, %338 : vector<8x128xi32>
    %340 = arith.extui %339 : vector<8x128xi1> to vector<8x128xi32>
    %341 = arith.sitofp %340 : vector<8x128xi32> to vector<8x128xf32>
    %342 = arith.addf %328, %341 : vector<8x128xf32>
    %343 = vector.extract_strided_slice %14 {offsets = [0, 128], sizes = [8, 128], strides = [1, 1]} : vector<8x256xf32> to vector<8x128xf32>
    %cst_136 = arith.constant 0.000000e+00 : f32
    %344 = vector.broadcast %cst_136 : f32 to vector<8x128xf32>
    %345 = arith.select %339, %343, %344 : vector<8x128xi1>, vector<8x128xf32>
    %346 = arith.addf %332, %345 : vector<8x128xf32>
    %347 = vector.extract_strided_slice %39 {offsets = [0, 128], sizes = [8, 128], strides = [1, 1]} : vector<8x256xf32> to vector<8x128xf32>
    %cst_137 = arith.constant 0.000000e+00 : f32
    %348 = vector.broadcast %cst_137 : f32 to vector<8x128xf32>
    %349 = arith.select %339, %347, %348 : vector<8x128xi1>, vector<8x128xf32>
    %350 = arith.addf %336, %349 : vector<8x128xf32>
    %c168 = arith.constant 168 : index
    %c0_138 = arith.constant 0 : index
    %351 = vector.load %arg4[%c168, %c0_138] : memref<360x128xf32, #tpu.memory_space<vmem>>, vector<8x128xf32>
    %352 = arith.addf %351, %342 : vector<8x128xf32>
    %c168_139 = arith.constant 168 : index
    %c0_140 = arith.constant 0 : index
    %353 = vector.load %arg4[%c168_139, %c0_140] : memref<360x128xf32, #tpu.memory_space<vmem>>, vector<8x128xf32>
    tpu.vector_store %arg4[%c168_139, %c0_140], %352 {strides = array<i32>} : memref<360x128xf32, #tpu.memory_space<vmem>>, vector<8x128xf32>,
    %c176 = arith.constant 176 : index
    %c0_141 = arith.constant 0 : index
    %354 = vector.load %arg4[%c176, %c0_141] : memref<360x128xf32, #tpu.memory_space<vmem>>, vector<8x128xf32>
    %355 = arith.addf %354, %346 : vector<8x128xf32>
    %c176_142 = arith.constant 176 : index
    %c0_143 = arith.constant 0 : index
    %356 = vector.load %arg4[%c176_142, %c0_143] : memref<360x128xf32, #tpu.memory_space<vmem>>, vector<8x128xf32>
    tpu.vector_store %arg4[%c176_142, %c0_143], %355 {strides = array<i32>} : memref<360x128xf32, #tpu.memory_space<vmem>>, vector<8x128xf32>,
    %c184 = arith.constant 184 : index
    %c0_144 = arith.constant 0 : index
    %357 = vector.load %arg4[%c184, %c0_144] : memref<360x128xf32, #tpu.memory_space<vmem>>, vector<8x128xf32>
    %358 = arith.addf %357, %350 : vector<8x128xf32>
    %c184_145 = arith.constant 184 : index
    %c0_146 = arith.constant 0 : index
    %359 = vector.load %arg4[%c184_145, %c0_146] : memref<360x128xf32, #tpu.memory_space<vmem>>, vector<8x128xf32>
    tpu.vector_store %arg4[%c184_145, %c0_146], %358 {strides = array<i32>} : memref<360x128xf32, #tpu.memory_space<vmem>>, vector<8x128xf32>,
    %cst_147 = arith.constant 0.000000e+00 : f32
    %360 = vector.broadcast %cst_147 : f32 to vector<8x128xf32>
    %cst_148 = arith.constant 0.000000e+00 : f32
    %361 = vector.broadcast %cst_148 : f32 to vector<8x128xf32>
    %cst_149 = arith.constant 0.000000e+00 : f32
    %362 = vector.broadcast %cst_149 : f32 to vector<8x128xf32>
    %363 = vector.extract_strided_slice %34 {offsets = [0, 0], sizes = [8, 128], strides = [1, 1]} : vector<8x256xi32> to vector<8x128xi32>
    %c8_i32 = arith.constant 8 : i32
    %364 = vector.broadcast %c8_i32 : i32 to vector<8x128xi32>
    %365 = arith.cmpi eq, %363, %364 : vector<8x128xi32>
    %366 = arith.extui %365 : vector<8x128xi1> to vector<8x128xi32>
    %367 = arith.sitofp %366 : vector<8x128xi32> to vector<8x128xf32>
    %368 = arith.addf %360, %367 : vector<8x128xf32>
    %369 = vector.extract_strided_slice %14 {offsets = [0, 0], sizes = [8, 128], strides = [1, 1]} : vector<8x256xf32> to vector<8x128xf32>
    %cst_150 = arith.constant 0.000000e+00 : f32
    %370 = vector.broadcast %cst_150 : f32 to vector<8x128xf32>
    %371 = arith.select %365, %369, %370 : vector<8x128xi1>, vector<8x128xf32>
    %372 = arith.addf %361, %371 : vector<8x128xf32>
    %373 = vector.extract_strided_slice %39 {offsets = [0, 0], sizes = [8, 128], strides = [1, 1]} : vector<8x256xf32> to vector<8x128xf32>
    %cst_151 = arith.constant 0.000000e+00 : f32
    %374 = vector.broadcast %cst_151 : f32 to vector<8x128xf32>
    %375 = arith.select %365, %373, %374 : vector<8x128xi1>, vector<8x128xf32>
    %376 = arith.addf %362, %375 : vector<8x128xf32>
    %377 = vector.extract_strided_slice %34 {offsets = [0, 128], sizes = [8, 128], strides = [1, 1]} : vector<8x256xi32> to vector<8x128xi32>
    %c8_i32_152 = arith.constant 8 : i32
    %378 = vector.broadcast %c8_i32_152 : i32 to vector<8x128xi32>
    %379 = arith.cmpi eq, %377, %378 : vector<8x128xi32>
    %380 = arith.extui %379 : vector<8x128xi1> to vector<8x128xi32>
    %381 = arith.sitofp %380 : vector<8x128xi32> to vector<8x128xf32>
    %382 = arith.addf %368, %381 : vector<8x128xf32>
    %383 = vector.extract_strided_slice %14 {offsets = [0, 128], sizes = [8, 128], strides = [1, 1]} : vector<8x256xf32> to vector<8x128xf32>
    %cst_153 = arith.constant 0.000000e+00 : f32
    %384 = vector.broadcast %cst_153 : f32 to vector<8x128xf32>
    %385 = arith.select %379, %383, %384 : vector<8x128xi1>, vector<8x128xf32>
    %386 = arith.addf %372, %385 : vector<8x128xf32>
    %387 = vector.extract_strided_slice %39 {offsets = [0, 128], sizes = [8, 128], strides = [1, 1]} : vector<8x256xf32> to vector<8x128xf32>
    %cst_154 = arith.constant 0.000000e+00 : f32
    %388 = vector.broadcast %cst_154 : f32 to vector<8x128xf32>
    %389 = arith.select %379, %387, %388 : vector<8x128xi1>, vector<8x128xf32>
    %390 = arith.addf %376, %389 : vector<8x128xf32>
    %c192 = arith.constant 192 : index
    %c0_155 = arith.constant 0 : index
    %391 = vector.load %arg4[%c192, %c0_155] : memref<360x128xf32, #tpu.memory_space<vmem>>, vector<8x128xf32>
    %392 = arith.addf %391, %382 : vector<8x128xf32>
    %c192_156 = arith.constant 192 : index
    %c0_157 = arith.constant 0 : index
    %393 = vector.load %arg4[%c192_156, %c0_157] : memref<360x128xf32, #tpu.memory_space<vmem>>, vector<8x128xf32>
    tpu.vector_store %arg4[%c192_156, %c0_157], %392 {strides = array<i32>} : memref<360x128xf32, #tpu.memory_space<vmem>>, vector<8x128xf32>,
    %c200 = arith.constant 200 : index
    %c0_158 = arith.constant 0 : index
    %394 = vector.load %arg4[%c200, %c0_158] : memref<360x128xf32, #tpu.memory_space<vmem>>, vector<8x128xf32>
    %395 = arith.addf %394, %386 : vector<8x128xf32>
    %c200_159 = arith.constant 200 : index
    %c0_160 = arith.constant 0 : index
    %396 = vector.load %arg4[%c200_159, %c0_160] : memref<360x128xf32, #tpu.memory_space<vmem>>, vector<8x128xf32>
    tpu.vector_store %arg4[%c200_159, %c0_160], %395 {strides = array<i32>} : memref<360x128xf32, #tpu.memory_space<vmem>>, vector<8x128xf32>,
    %c208 = arith.constant 208 : index
    %c0_161 = arith.constant 0 : index
    %397 = vector.load %arg4[%c208, %c0_161] : memref<360x128xf32, #tpu.memory_space<vmem>>, vector<8x128xf32>
    %398 = arith.addf %397, %390 : vector<8x128xf32>
    %c208_162 = arith.constant 208 : index
    %c0_163 = arith.constant 0 : index
    %399 = vector.load %arg4[%c208_162, %c0_163] : memref<360x128xf32, #tpu.memory_space<vmem>>, vector<8x128xf32>
    tpu.vector_store %arg4[%c208_162, %c0_163], %398 {strides = array<i32>} : memref<360x128xf32, #tpu.memory_space<vmem>>, vector<8x128xf32>,
    %cst_164 = arith.constant 0.000000e+00 : f32
    %400 = vector.broadcast %cst_164 : f32 to vector<8x128xf32>
    %cst_165 = arith.constant 0.000000e+00 : f32
    %401 = vector.broadcast %cst_165 : f32 to vector<8x128xf32>
    %cst_166 = arith.constant 0.000000e+00 : f32
    %402 = vector.broadcast %cst_166 : f32 to vector<8x128xf32>
    %403 = vector.extract_strided_slice %34 {offsets = [0, 0], sizes = [8, 128], strides = [1, 1]} : vector<8x256xi32> to vector<8x128xi32>
    %c9_i32 = arith.constant 9 : i32
    %404 = vector.broadcast %c9_i32 : i32 to vector<8x128xi32>
    %405 = arith.cmpi eq, %403, %404 : vector<8x128xi32>
    %406 = arith.extui %405 : vector<8x128xi1> to vector<8x128xi32>
    %407 = arith.sitofp %406 : vector<8x128xi32> to vector<8x128xf32>
    %408 = arith.addf %400, %407 : vector<8x128xf32>
    %409 = vector.extract_strided_slice %14 {offsets = [0, 0], sizes = [8, 128], strides = [1, 1]} : vector<8x256xf32> to vector<8x128xf32>
    %cst_167 = arith.constant 0.000000e+00 : f32
    %410 = vector.broadcast %cst_167 : f32 to vector<8x128xf32>
    %411 = arith.select %405, %409, %410 : vector<8x128xi1>, vector<8x128xf32>
    %412 = arith.addf %401, %411 : vector<8x128xf32>
    %413 = vector.extract_strided_slice %39 {offsets = [0, 0], sizes = [8, 128], strides = [1, 1]} : vector<8x256xf32> to vector<8x128xf32>
    %cst_168 = arith.constant 0.000000e+00 : f32
    %414 = vector.broadcast %cst_168 : f32 to vector<8x128xf32>
    %415 = arith.select %405, %413, %414 : vector<8x128xi1>, vector<8x128xf32>
    %416 = arith.addf %402, %415 : vector<8x128xf32>
    %417 = vector.extract_strided_slice %34 {offsets = [0, 128], sizes = [8, 128], strides = [1, 1]} : vector<8x256xi32> to vector<8x128xi32>
    %c9_i32_169 = arith.constant 9 : i32
    %418 = vector.broadcast %c9_i32_169 : i32 to vector<8x128xi32>
    %419 = arith.cmpi eq, %417, %418 : vector<8x128xi32>
    %420 = arith.extui %419 : vector<8x128xi1> to vector<8x128xi32>
    %421 = arith.sitofp %420 : vector<8x128xi32> to vector<8x128xf32>
    %422 = arith.addf %408, %421 : vector<8x128xf32>
    %423 = vector.extract_strided_slice %14 {offsets = [0, 128], sizes = [8, 128], strides = [1, 1]} : vector<8x256xf32> to vector<8x128xf32>
    %cst_170 = arith.constant 0.000000e+00 : f32
    %424 = vector.broadcast %cst_170 : f32 to vector<8x128xf32>
    %425 = arith.select %419, %423, %424 : vector<8x128xi1>, vector<8x128xf32>
    %426 = arith.addf %412, %425 : vector<8x128xf32>
    %427 = vector.extract_strided_slice %39 {offsets = [0, 128], sizes = [8, 128], strides = [1, 1]} : vector<8x256xf32> to vector<8x128xf32>
    %cst_171 = arith.constant 0.000000e+00 : f32
    %428 = vector.broadcast %cst_171 : f32 to vector<8x128xf32>
    %429 = arith.select %419, %427, %428 : vector<8x128xi1>, vector<8x128xf32>
    %430 = arith.addf %416, %429 : vector<8x128xf32>
    %c216 = arith.constant 216 : index
    %c0_172 = arith.constant 0 : index
    %431 = vector.load %arg4[%c216, %c0_172] : memref<360x128xf32, #tpu.memory_space<vmem>>, vector<8x128xf32>
    %432 = arith.addf %431, %422 : vector<8x128xf32>
    %c216_173 = arith.constant 216 : index
    %c0_174 = arith.constant 0 : index
    %433 = vector.load %arg4[%c216_173, %c0_174] : memref<360x128xf32, #tpu.memory_space<vmem>>, vector<8x128xf32>
    tpu.vector_store %arg4[%c216_173, %c0_174], %432 {strides = array<i32>} : memref<360x128xf32, #tpu.memory_space<vmem>>, vector<8x128xf32>,
    %c224 = arith.constant 224 : index
    %c0_175 = arith.constant 0 : index
    %434 = vector.load %arg4[%c224, %c0_175] : memref<360x128xf32, #tpu.memory_space<vmem>>, vector<8x128xf32>
    %435 = arith.addf %434, %426 : vector<8x128xf32>
    %c224_176 = arith.constant 224 : index
    %c0_177 = arith.constant 0 : index
    %436 = vector.load %arg4[%c224_176, %c0_177] : memref<360x128xf32, #tpu.memory_space<vmem>>, vector<8x128xf32>
    tpu.vector_store %arg4[%c224_176, %c0_177], %435 {strides = array<i32>} : memref<360x128xf32, #tpu.memory_space<vmem>>, vector<8x128xf32>,
    %c232 = arith.constant 232 : index
    %c0_178 = arith.constant 0 : index
    %437 = vector.load %arg4[%c232, %c0_178] : memref<360x128xf32, #tpu.memory_space<vmem>>, vector<8x128xf32>
    %438 = arith.addf %437, %430 : vector<8x128xf32>
    %c232_179 = arith.constant 232 : index
    %c0_180 = arith.constant 0 : index
    %439 = vector.load %arg4[%c232_179, %c0_180] : memref<360x128xf32, #tpu.memory_space<vmem>>, vector<8x128xf32>
    tpu.vector_store %arg4[%c232_179, %c0_180], %438 {strides = array<i32>} : memref<360x128xf32, #tpu.memory_space<vmem>>, vector<8x128xf32>,
    %cst_181 = arith.constant 0.000000e+00 : f32
    %440 = vector.broadcast %cst_181 : f32 to vector<8x128xf32>
    %cst_182 = arith.constant 0.000000e+00 : f32
    %441 = vector.broadcast %cst_182 : f32 to vector<8x128xf32>
    %cst_183 = arith.constant 0.000000e+00 : f32
    %442 = vector.broadcast %cst_183 : f32 to vector<8x128xf32>
    %443 = vector.extract_strided_slice %34 {offsets = [0, 0], sizes = [8, 128], strides = [1, 1]} : vector<8x256xi32> to vector<8x128xi32>
    %c10_i32 = arith.constant 10 : i32
    %444 = vector.broadcast %c10_i32 : i32 to vector<8x128xi32>
    %445 = arith.cmpi eq, %443, %444 : vector<8x128xi32>
    %446 = arith.extui %445 : vector<8x128xi1> to vector<8x128xi32>
    %447 = arith.sitofp %446 : vector<8x128xi32> to vector<8x128xf32>
    %448 = arith.addf %440, %447 : vector<8x128xf32>
    %449 = vector.extract_strided_slice %14 {offsets = [0, 0], sizes = [8, 128], strides = [1, 1]} : vector<8x256xf32> to vector<8x128xf32>
    %cst_184 = arith.constant 0.000000e+00 : f32
    %450 = vector.broadcast %cst_184 : f32 to vector<8x128xf32>
    %451 = arith.select %445, %449, %450 : vector<8x128xi1>, vector<8x128xf32>
    %452 = arith.addf %441, %451 : vector<8x128xf32>
    %453 = vector.extract_strided_slice %39 {offsets = [0, 0], sizes = [8, 128], strides = [1, 1]} : vector<8x256xf32> to vector<8x128xf32>
    %cst_185 = arith.constant 0.000000e+00 : f32
    %454 = vector.broadcast %cst_185 : f32 to vector<8x128xf32>
    %455 = arith.select %445, %453, %454 : vector<8x128xi1>, vector<8x128xf32>
    %456 = arith.addf %442, %455 : vector<8x128xf32>
    %457 = vector.extract_strided_slice %34 {offsets = [0, 128], sizes = [8, 128], strides = [1, 1]} : vector<8x256xi32> to vector<8x128xi32>
    %c10_i32_186 = arith.constant 10 : i32
    %458 = vector.broadcast %c10_i32_186 : i32 to vector<8x128xi32>
    %459 = arith.cmpi eq, %457, %458 : vector<8x128xi32>
    %460 = arith.extui %459 : vector<8x128xi1> to vector<8x128xi32>
    %461 = arith.sitofp %460 : vector<8x128xi32> to vector<8x128xf32>
    %462 = arith.addf %448, %461 : vector<8x128xf32>
    %463 = vector.extract_strided_slice %14 {offsets = [0, 128], sizes = [8, 128], strides = [1, 1]} : vector<8x256xf32> to vector<8x128xf32>
    %cst_187 = arith.constant 0.000000e+00 : f32
    %464 = vector.broadcast %cst_187 : f32 to vector<8x128xf32>
    %465 = arith.select %459, %463, %464 : vector<8x128xi1>, vector<8x128xf32>
    %466 = arith.addf %452, %465 : vector<8x128xf32>
    %467 = vector.extract_strided_slice %39 {offsets = [0, 128], sizes = [8, 128], strides = [1, 1]} : vector<8x256xf32> to vector<8x128xf32>
    %cst_188 = arith.constant 0.000000e+00 : f32
    %468 = vector.broadcast %cst_188 : f32 to vector<8x128xf32>
    %469 = arith.select %459, %467, %468 : vector<8x128xi1>, vector<8x128xf32>
    %470 = arith.addf %456, %469 : vector<8x128xf32>
    %c240 = arith.constant 240 : index
    %c0_189 = arith.constant 0 : index
    %471 = vector.load %arg4[%c240, %c0_189] : memref<360x128xf32, #tpu.memory_space<vmem>>, vector<8x128xf32>
    %472 = arith.addf %471, %462 : vector<8x128xf32>
    %c240_190 = arith.constant 240 : index
    %c0_191 = arith.constant 0 : index
    %473 = vector.load %arg4[%c240_190, %c0_191] : memref<360x128xf32, #tpu.memory_space<vmem>>, vector<8x128xf32>
    tpu.vector_store %arg4[%c240_190, %c0_191], %472 {strides = array<i32>} : memref<360x128xf32, #tpu.memory_space<vmem>>, vector<8x128xf32>,
    %c248 = arith.constant 248 : index
    %c0_192 = arith.constant 0 : index
    %474 = vector.load %arg4[%c248, %c0_192] : memref<360x128xf32, #tpu.memory_space<vmem>>, vector<8x128xf32>
    %475 = arith.addf %474, %466 : vector<8x128xf32>
    %c248_193 = arith.constant 248 : index
    %c0_194 = arith.constant 0 : index
    %476 = vector.load %arg4[%c248_193, %c0_194] : memref<360x128xf32, #tpu.memory_space<vmem>>, vector<8x128xf32>
    tpu.vector_store %arg4[%c248_193, %c0_194], %475 {strides = array<i32>} : memref<360x128xf32, #tpu.memory_space<vmem>>, vector<8x128xf32>,
    %c256 = arith.constant 256 : index
    %c0_195 = arith.constant 0 : index
    %477 = vector.load %arg4[%c256, %c0_195] : memref<360x128xf32, #tpu.memory_space<vmem>>, vector<8x128xf32>
    %478 = arith.addf %477, %470 : vector<8x128xf32>
    %c256_196 = arith.constant 256 : index
    %c0_197 = arith.constant 0 : index
    %479 = vector.load %arg4[%c256_196, %c0_197] : memref<360x128xf32, #tpu.memory_space<vmem>>, vector<8x128xf32>
    tpu.vector_store %arg4[%c256_196, %c0_197], %478 {strides = array<i32>} : memref<360x128xf32, #tpu.memory_space<vmem>>, vector<8x128xf32>,
    %cst_198 = arith.constant 0.000000e+00 : f32
    %480 = vector.broadcast %cst_198 : f32 to vector<8x128xf32>
    %cst_199 = arith.constant 0.000000e+00 : f32
    %481 = vector.broadcast %cst_199 : f32 to vector<8x128xf32>
    %cst_200 = arith.constant 0.000000e+00 : f32
    %482 = vector.broadcast %cst_200 : f32 to vector<8x128xf32>
    %483 = vector.extract_strided_slice %34 {offsets = [0, 0], sizes = [8, 128], strides = [1, 1]} : vector<8x256xi32> to vector<8x128xi32>
    %c11_i32 = arith.constant 11 : i32
    %484 = vector.broadcast %c11_i32 : i32 to vector<8x128xi32>
    %485 = arith.cmpi eq, %483, %484 : vector<8x128xi32>
    %486 = arith.extui %485 : vector<8x128xi1> to vector<8x128xi32>
    %487 = arith.sitofp %486 : vector<8x128xi32> to vector<8x128xf32>
    %488 = arith.addf %480, %487 : vector<8x128xf32>
    %489 = vector.extract_strided_slice %14 {offsets = [0, 0], sizes = [8, 128], strides = [1, 1]} : vector<8x256xf32> to vector<8x128xf32>
    %cst_201 = arith.constant 0.000000e+00 : f32
    %490 = vector.broadcast %cst_201 : f32 to vector<8x128xf32>
    %491 = arith.select %485, %489, %490 : vector<8x128xi1>, vector<8x128xf32>
    %492 = arith.addf %481, %491 : vector<8x128xf32>
    %493 = vector.extract_strided_slice %39 {offsets = [0, 0], sizes = [8, 128], strides = [1, 1]} : vector<8x256xf32> to vector<8x128xf32>
    %cst_202 = arith.constant 0.000000e+00 : f32
    %494 = vector.broadcast %cst_202 : f32 to vector<8x128xf32>
    %495 = arith.select %485, %493, %494 : vector<8x128xi1>, vector<8x128xf32>
    %496 = arith.addf %482, %495 : vector<8x128xf32>
    %497 = vector.extract_strided_slice %34 {offsets = [0, 128], sizes = [8, 128], strides = [1, 1]} : vector<8x256xi32> to vector<8x128xi32>
    %c11_i32_203 = arith.constant 11 : i32
    %498 = vector.broadcast %c11_i32_203 : i32 to vector<8x128xi32>
    %499 = arith.cmpi eq, %497, %498 : vector<8x128xi32>
    %500 = arith.extui %499 : vector<8x128xi1> to vector<8x128xi32>
    %501 = arith.sitofp %500 : vector<8x128xi32> to vector<8x128xf32>
    %502 = arith.addf %488, %501 : vector<8x128xf32>
    %503 = vector.extract_strided_slice %14 {offsets = [0, 128], sizes = [8, 128], strides = [1, 1]} : vector<8x256xf32> to vector<8x128xf32>
    %cst_204 = arith.constant 0.000000e+00 : f32
    %504 = vector.broadcast %cst_204 : f32 to vector<8x128xf32>
    %505 = arith.select %499, %503, %504 : vector<8x128xi1>, vector<8x128xf32>
    %506 = arith.addf %492, %505 : vector<8x128xf32>
    %507 = vector.extract_strided_slice %39 {offsets = [0, 128], sizes = [8, 128], strides = [1, 1]} : vector<8x256xf32> to vector<8x128xf32>
    %cst_205 = arith.constant 0.000000e+00 : f32
    %508 = vector.broadcast %cst_205 : f32 to vector<8x128xf32>
    %509 = arith.select %499, %507, %508 : vector<8x128xi1>, vector<8x128xf32>
    %510 = arith.addf %496, %509 : vector<8x128xf32>
    %c264 = arith.constant 264 : index
    %c0_206 = arith.constant 0 : index
    %511 = vector.load %arg4[%c264, %c0_206] : memref<360x128xf32, #tpu.memory_space<vmem>>, vector<8x128xf32>
    %512 = arith.addf %511, %502 : vector<8x128xf32>
    %c264_207 = arith.constant 264 : index
    %c0_208 = arith.constant 0 : index
    %513 = vector.load %arg4[%c264_207, %c0_208] : memref<360x128xf32, #tpu.memory_space<vmem>>, vector<8x128xf32>
    tpu.vector_store %arg4[%c264_207, %c0_208], %512 {strides = array<i32>} : memref<360x128xf32, #tpu.memory_space<vmem>>, vector<8x128xf32>,
    %c272 = arith.constant 272 : index
    %c0_209 = arith.constant 0 : index
    %514 = vector.load %arg4[%c272, %c0_209] : memref<360x128xf32, #tpu.memory_space<vmem>>, vector<8x128xf32>
    %515 = arith.addf %514, %506 : vector<8x128xf32>
    %c272_210 = arith.constant 272 : index
    %c0_211 = arith.constant 0 : index
    %516 = vector.load %arg4[%c272_210, %c0_211] : memref<360x128xf32, #tpu.memory_space<vmem>>, vector<8x128xf32>
    tpu.vector_store %arg4[%c272_210, %c0_211], %515 {strides = array<i32>} : memref<360x128xf32, #tpu.memory_space<vmem>>, vector<8x128xf32>,
    %c280 = arith.constant 280 : index
    %c0_212 = arith.constant 0 : index
    %517 = vector.load %arg4[%c280, %c0_212] : memref<360x128xf32, #tpu.memory_space<vmem>>, vector<8x128xf32>
    %518 = arith.addf %517, %510 : vector<8x128xf32>
    %c280_213 = arith.constant 280 : index
    %c0_214 = arith.constant 0 : index
    %519 = vector.load %arg4[%c280_213, %c0_214] : memref<360x128xf32, #tpu.memory_space<vmem>>, vector<8x128xf32>
    tpu.vector_store %arg4[%c280_213, %c0_214], %518 {strides = array<i32>} : memref<360x128xf32, #tpu.memory_space<vmem>>, vector<8x128xf32>,
    %cst_215 = arith.constant 0.000000e+00 : f32
    %520 = vector.broadcast %cst_215 : f32 to vector<8x128xf32>
    %cst_216 = arith.constant 0.000000e+00 : f32
    %521 = vector.broadcast %cst_216 : f32 to vector<8x128xf32>
    %cst_217 = arith.constant 0.000000e+00 : f32
    %522 = vector.broadcast %cst_217 : f32 to vector<8x128xf32>
    %523 = vector.extract_strided_slice %34 {offsets = [0, 0], sizes = [8, 128], strides = [1, 1]} : vector<8x256xi32> to vector<8x128xi32>
    %c12_i32 = arith.constant 12 : i32
    %524 = vector.broadcast %c12_i32 : i32 to vector<8x128xi32>
    %525 = arith.cmpi eq, %523, %524 : vector<8x128xi32>
    %526 = arith.extui %525 : vector<8x128xi1> to vector<8x128xi32>
    %527 = arith.sitofp %526 : vector<8x128xi32> to vector<8x128xf32>
    %528 = arith.addf %520, %527 : vector<8x128xf32>
    %529 = vector.extract_strided_slice %14 {offsets = [0, 0], sizes = [8, 128], strides = [1, 1]} : vector<8x256xf32> to vector<8x128xf32>
    %cst_218 = arith.constant 0.000000e+00 : f32
    %530 = vector.broadcast %cst_218 : f32 to vector<8x128xf32>
    %531 = arith.select %525, %529, %530 : vector<8x128xi1>, vector<8x128xf32>
    %532 = arith.addf %521, %531 : vector<8x128xf32>
    %533 = vector.extract_strided_slice %39 {offsets = [0, 0], sizes = [8, 128], strides = [1, 1]} : vector<8x256xf32> to vector<8x128xf32>
    %cst_219 = arith.constant 0.000000e+00 : f32
    %534 = vector.broadcast %cst_219 : f32 to vector<8x128xf32>
    %535 = arith.select %525, %533, %534 : vector<8x128xi1>, vector<8x128xf32>
    %536 = arith.addf %522, %535 : vector<8x128xf32>
    %537 = vector.extract_strided_slice %34 {offsets = [0, 128], sizes = [8, 128], strides = [1, 1]} : vector<8x256xi32> to vector<8x128xi32>
    %c12_i32_220 = arith.constant 12 : i32
    %538 = vector.broadcast %c12_i32_220 : i32 to vector<8x128xi32>
    %539 = arith.cmpi eq, %537, %538 : vector<8x128xi32>
    %540 = arith.extui %539 : vector<8x128xi1> to vector<8x128xi32>
    %541 = arith.sitofp %540 : vector<8x128xi32> to vector<8x128xf32>
    %542 = arith.addf %528, %541 : vector<8x128xf32>
    %543 = vector.extract_strided_slice %14 {offsets = [0, 128], sizes = [8, 128], strides = [1, 1]} : vector<8x256xf32> to vector<8x128xf32>
    %cst_221 = arith.constant 0.000000e+00 : f32
    %544 = vector.broadcast %cst_221 : f32 to vector<8x128xf32>
    %545 = arith.select %539, %543, %544 : vector<8x128xi1>, vector<8x128xf32>
    %546 = arith.addf %532, %545 : vector<8x128xf32>
    %547 = vector.extract_strided_slice %39 {offsets = [0, 128], sizes = [8, 128], strides = [1, 1]} : vector<8x256xf32> to vector<8x128xf32>
    %cst_222 = arith.constant 0.000000e+00 : f32
    %548 = vector.broadcast %cst_222 : f32 to vector<8x128xf32>
    %549 = arith.select %539, %547, %548 : vector<8x128xi1>, vector<8x128xf32>
    %550 = arith.addf %536, %549 : vector<8x128xf32>
    %c288 = arith.constant 288 : index
    %c0_223 = arith.constant 0 : index
    %551 = vector.load %arg4[%c288, %c0_223] : memref<360x128xf32, #tpu.memory_space<vmem>>, vector<8x128xf32>
    %552 = arith.addf %551, %542 : vector<8x128xf32>
    %c288_224 = arith.constant 288 : index
    %c0_225 = arith.constant 0 : index
    %553 = vector.load %arg4[%c288_224, %c0_225] : memref<360x128xf32, #tpu.memory_space<vmem>>, vector<8x128xf32>
    tpu.vector_store %arg4[%c288_224, %c0_225], %552 {strides = array<i32>} : memref<360x128xf32, #tpu.memory_space<vmem>>, vector<8x128xf32>,
    %c296 = arith.constant 296 : index
    %c0_226 = arith.constant 0 : index
    %554 = vector.load %arg4[%c296, %c0_226] : memref<360x128xf32, #tpu.memory_space<vmem>>, vector<8x128xf32>
    %555 = arith.addf %554, %546 : vector<8x128xf32>
    %c296_227 = arith.constant 296 : index
    %c0_228 = arith.constant 0 : index
    %556 = vector.load %arg4[%c296_227, %c0_228] : memref<360x128xf32, #tpu.memory_space<vmem>>, vector<8x128xf32>
    tpu.vector_store %arg4[%c296_227, %c0_228], %555 {strides = array<i32>} : memref<360x128xf32, #tpu.memory_space<vmem>>, vector<8x128xf32>,
    %c304 = arith.constant 304 : index
    %c0_229 = arith.constant 0 : index
    %557 = vector.load %arg4[%c304, %c0_229] : memref<360x128xf32, #tpu.memory_space<vmem>>, vector<8x128xf32>
    %558 = arith.addf %557, %550 : vector<8x128xf32>
    %c304_230 = arith.constant 304 : index
    %c0_231 = arith.constant 0 : index
    %559 = vector.load %arg4[%c304_230, %c0_231] : memref<360x128xf32, #tpu.memory_space<vmem>>, vector<8x128xf32>
    tpu.vector_store %arg4[%c304_230, %c0_231], %558 {strides = array<i32>} : memref<360x128xf32, #tpu.memory_space<vmem>>, vector<8x128xf32>,
    %cst_232 = arith.constant 0.000000e+00 : f32
    %560 = vector.broadcast %cst_232 : f32 to vector<8x128xf32>
    %cst_233 = arith.constant 0.000000e+00 : f32
    %561 = vector.broadcast %cst_233 : f32 to vector<8x128xf32>
    %cst_234 = arith.constant 0.000000e+00 : f32
    %562 = vector.broadcast %cst_234 : f32 to vector<8x128xf32>
    %563 = vector.extract_strided_slice %34 {offsets = [0, 0], sizes = [8, 128], strides = [1, 1]} : vector<8x256xi32> to vector<8x128xi32>
    %c13_i32 = arith.constant 13 : i32
    %564 = vector.broadcast %c13_i32 : i32 to vector<8x128xi32>
    %565 = arith.cmpi eq, %563, %564 : vector<8x128xi32>
    %566 = arith.extui %565 : vector<8x128xi1> to vector<8x128xi32>
    %567 = arith.sitofp %566 : vector<8x128xi32> to vector<8x128xf32>
    %568 = arith.addf %560, %567 : vector<8x128xf32>
    %569 = vector.extract_strided_slice %14 {offsets = [0, 0], sizes = [8, 128], strides = [1, 1]} : vector<8x256xf32> to vector<8x128xf32>
    %cst_235 = arith.constant 0.000000e+00 : f32
    %570 = vector.broadcast %cst_235 : f32 to vector<8x128xf32>
    %571 = arith.select %565, %569, %570 : vector<8x128xi1>, vector<8x128xf32>
    %572 = arith.addf %561, %571 : vector<8x128xf32>
    %573 = vector.extract_strided_slice %39 {offsets = [0, 0], sizes = [8, 128], strides = [1, 1]} : vector<8x256xf32> to vector<8x128xf32>
    %cst_236 = arith.constant 0.000000e+00 : f32
    %574 = vector.broadcast %cst_236 : f32 to vector<8x128xf32>
    %575 = arith.select %565, %573, %574 : vector<8x128xi1>, vector<8x128xf32>
    %576 = arith.addf %562, %575 : vector<8x128xf32>
    %577 = vector.extract_strided_slice %34 {offsets = [0, 128], sizes = [8, 128], strides = [1, 1]} : vector<8x256xi32> to vector<8x128xi32>
    %c13_i32_237 = arith.constant 13 : i32
    %578 = vector.broadcast %c13_i32_237 : i32 to vector<8x128xi32>
    %579 = arith.cmpi eq, %577, %578 : vector<8x128xi32>
    %580 = arith.extui %579 : vector<8x128xi1> to vector<8x128xi32>
    %581 = arith.sitofp %580 : vector<8x128xi32> to vector<8x128xf32>
    %582 = arith.addf %568, %581 : vector<8x128xf32>
    %583 = vector.extract_strided_slice %14 {offsets = [0, 128], sizes = [8, 128], strides = [1, 1]} : vector<8x256xf32> to vector<8x128xf32>
    %cst_238 = arith.constant 0.000000e+00 : f32
    %584 = vector.broadcast %cst_238 : f32 to vector<8x128xf32>
    %585 = arith.select %579, %583, %584 : vector<8x128xi1>, vector<8x128xf32>
    %586 = arith.addf %572, %585 : vector<8x128xf32>
    %587 = vector.extract_strided_slice %39 {offsets = [0, 128], sizes = [8, 128], strides = [1, 1]} : vector<8x256xf32> to vector<8x128xf32>
    %cst_239 = arith.constant 0.000000e+00 : f32
    %588 = vector.broadcast %cst_239 : f32 to vector<8x128xf32>
    %589 = arith.select %579, %587, %588 : vector<8x128xi1>, vector<8x128xf32>
    %590 = arith.addf %576, %589 : vector<8x128xf32>
    %c312 = arith.constant 312 : index
    %c0_240 = arith.constant 0 : index
    %591 = vector.load %arg4[%c312, %c0_240] : memref<360x128xf32, #tpu.memory_space<vmem>>, vector<8x128xf32>
    %592 = arith.addf %591, %582 : vector<8x128xf32>
    %c312_241 = arith.constant 312 : index
    %c0_242 = arith.constant 0 : index
    %593 = vector.load %arg4[%c312_241, %c0_242] : memref<360x128xf32, #tpu.memory_space<vmem>>, vector<8x128xf32>
    tpu.vector_store %arg4[%c312_241, %c0_242], %592 {strides = array<i32>} : memref<360x128xf32, #tpu.memory_space<vmem>>, vector<8x128xf32>,
    %c320 = arith.constant 320 : index
    %c0_243 = arith.constant 0 : index
    %594 = vector.load %arg4[%c320, %c0_243] : memref<360x128xf32, #tpu.memory_space<vmem>>, vector<8x128xf32>
    %595 = arith.addf %594, %586 : vector<8x128xf32>
    %c320_244 = arith.constant 320 : index
    %c0_245 = arith.constant 0 : index
    %596 = vector.load %arg4[%c320_244, %c0_245] : memref<360x128xf32, #tpu.memory_space<vmem>>, vector<8x128xf32>
    tpu.vector_store %arg4[%c320_244, %c0_245], %595 {strides = array<i32>} : memref<360x128xf32, #tpu.memory_space<vmem>>, vector<8x128xf32>,
    %c328 = arith.constant 328 : index
    %c0_246 = arith.constant 0 : index
    %597 = vector.load %arg4[%c328, %c0_246] : memref<360x128xf32, #tpu.memory_space<vmem>>, vector<8x128xf32>
    %598 = arith.addf %597, %590 : vector<8x128xf32>
    %c328_247 = arith.constant 328 : index
    %c0_248 = arith.constant 0 : index
    %599 = vector.load %arg4[%c328_247, %c0_248] : memref<360x128xf32, #tpu.memory_space<vmem>>, vector<8x128xf32>
    tpu.vector_store %arg4[%c328_247, %c0_248], %598 {strides = array<i32>} : memref<360x128xf32, #tpu.memory_space<vmem>>, vector<8x128xf32>,
    %cst_249 = arith.constant 0.000000e+00 : f32
    %600 = vector.broadcast %cst_249 : f32 to vector<8x128xf32>
    %cst_250 = arith.constant 0.000000e+00 : f32
    %601 = vector.broadcast %cst_250 : f32 to vector<8x128xf32>
    %cst_251 = arith.constant 0.000000e+00 : f32
    %602 = vector.broadcast %cst_251 : f32 to vector<8x128xf32>
    %603 = vector.extract_strided_slice %34 {offsets = [0, 0], sizes = [8, 128], strides = [1, 1]} : vector<8x256xi32> to vector<8x128xi32>
    %c14_i32_252 = arith.constant 14 : i32
    %604 = vector.broadcast %c14_i32_252 : i32 to vector<8x128xi32>
    %605 = arith.cmpi eq, %603, %604 : vector<8x128xi32>
    %606 = arith.extui %605 : vector<8x128xi1> to vector<8x128xi32>
    %607 = arith.sitofp %606 : vector<8x128xi32> to vector<8x128xf32>
    %608 = arith.addf %600, %607 : vector<8x128xf32>
    %609 = vector.extract_strided_slice %14 {offsets = [0, 0], sizes = [8, 128], strides = [1, 1]} : vector<8x256xf32> to vector<8x128xf32>
    %cst_253 = arith.constant 0.000000e+00 : f32
    %610 = vector.broadcast %cst_253 : f32 to vector<8x128xf32>
    %611 = arith.select %605, %609, %610 : vector<8x128xi1>, vector<8x128xf32>
    %612 = arith.addf %601, %611 : vector<8x128xf32>
    %613 = vector.extract_strided_slice %39 {offsets = [0, 0], sizes = [8, 128], strides = [1, 1]} : vector<8x256xf32> to vector<8x128xf32>
    %cst_254 = arith.constant 0.000000e+00 : f32
    %614 = vector.broadcast %cst_254 : f32 to vector<8x128xf32>
    %615 = arith.select %605, %613, %614 : vector<8x128xi1>, vector<8x128xf32>
    %616 = arith.addf %602, %615 : vector<8x128xf32>
    %617 = vector.extract_strided_slice %34 {offsets = [0, 128], sizes = [8, 128], strides = [1, 1]} : vector<8x256xi32> to vector<8x128xi32>
    %c14_i32_255 = arith.constant 14 : i32
    %618 = vector.broadcast %c14_i32_255 : i32 to vector<8x128xi32>
    %619 = arith.cmpi eq, %617, %618 : vector<8x128xi32>
    %620 = arith.extui %619 : vector<8x128xi1> to vector<8x128xi32>
    %621 = arith.sitofp %620 : vector<8x128xi32> to vector<8x128xf32>
    %622 = arith.addf %608, %621 : vector<8x128xf32>
    %623 = vector.extract_strided_slice %14 {offsets = [0, 128], sizes = [8, 128], strides = [1, 1]} : vector<8x256xf32> to vector<8x128xf32>
    %cst_256 = arith.constant 0.000000e+00 : f32
    %624 = vector.broadcast %cst_256 : f32 to vector<8x128xf32>
    %625 = arith.select %619, %623, %624 : vector<8x128xi1>, vector<8x128xf32>
    %626 = arith.addf %612, %625 : vector<8x128xf32>
    %627 = vector.extract_strided_slice %39 {offsets = [0, 128], sizes = [8, 128], strides = [1, 1]} : vector<8x256xf32> to vector<8x128xf32>
    %cst_257 = arith.constant 0.000000e+00 : f32
    %628 = vector.broadcast %cst_257 : f32 to vector<8x128xf32>
    %629 = arith.select %619, %627, %628 : vector<8x128xi1>, vector<8x128xf32>
    %630 = arith.addf %616, %629 : vector<8x128xf32>
    %c336 = arith.constant 336 : index
    %c0_258 = arith.constant 0 : index
    %631 = vector.load %arg4[%c336, %c0_258] : memref<360x128xf32, #tpu.memory_space<vmem>>, vector<8x128xf32>
    %632 = arith.addf %631, %622 : vector<8x128xf32>
    %c336_259 = arith.constant 336 : index
    %c0_260 = arith.constant 0 : index
    %633 = vector.load %arg4[%c336_259, %c0_260] : memref<360x128xf32, #tpu.memory_space<vmem>>, vector<8x128xf32>
    tpu.vector_store %arg4[%c336_259, %c0_260], %632 {strides = array<i32>} : memref<360x128xf32, #tpu.memory_space<vmem>>, vector<8x128xf32>,
    %c344 = arith.constant 344 : index
    %c0_261 = arith.constant 0 : index
    %634 = vector.load %arg4[%c344, %c0_261] : memref<360x128xf32, #tpu.memory_space<vmem>>, vector<8x128xf32>
    %635 = arith.addf %634, %626 : vector<8x128xf32>
    %c344_262 = arith.constant 344 : index
    %c0_263 = arith.constant 0 : index
    %636 = vector.load %arg4[%c344_262, %c0_263] : memref<360x128xf32, #tpu.memory_space<vmem>>, vector<8x128xf32>
    tpu.vector_store %arg4[%c344_262, %c0_263], %635 {strides = array<i32>} : memref<360x128xf32, #tpu.memory_space<vmem>>, vector<8x128xf32>,
    %c352 = arith.constant 352 : index
    %c0_264 = arith.constant 0 : index
    %637 = vector.load %arg4[%c352, %c0_264] : memref<360x128xf32, #tpu.memory_space<vmem>>, vector<8x128xf32>
    %638 = arith.addf %637, %630 : vector<8x128xf32>
    %c352_265 = arith.constant 352 : index
    %c0_266 = arith.constant 0 : index
    %639 = vector.load %arg4[%c352_265, %c0_266] : memref<360x128xf32, #tpu.memory_space<vmem>>, vector<8x128xf32>
    tpu.vector_store %arg4[%c352_265, %c0_266], %638 {strides = array<i32>} : memref<360x128xf32, #tpu.memory_space<vmem>>, vector<8x128xf32>,
    return
  }
  func.func @transform_0(%arg0: i32, %arg1: i32) -> (i32, i32) {
    %c1_i32 = arith.constant 1 : i32
    %0 = arith.muli %arg0, %c1_i32 : i32
    %1 = arith.addi %0, %arg1 : i32
    %c0_i32 = arith.constant 0 : i32
    %2 = arith.minsi %1, %c0_i32 : i32
    %c0_i32_0 = arith.constant 0 : i32
    %c0_i32_1 = arith.constant 0 : i32
    return %c0_i32_0, %2 : i32, i32
  }
  func.func @transform_1(%arg0: i32, %arg1: i32) -> (i32, i32) {
    %c1_i32 = arith.constant 1 : i32
    %0 = arith.muli %arg0, %c1_i32 : i32
    %1 = arith.addi %0, %arg1 : i32
    %c0_i32 = arith.constant 0 : i32
    %2 = arith.minsi %1, %c0_i32 : i32
    %c0_i32_0 = arith.constant 0 : i32
    %c0_i32_1 = arith.constant 0 : i32
    return %c0_i32_0, %2 : i32, i32
  }
  func.func @transform_2(%arg0: i32, %arg1: i32) -> (i32, i32) {
    %c0_i32 = arith.constant 0 : i32
    %c0_i32_0 = arith.constant 0 : i32
    return %arg0, %c0_i32 : i32, i32
  }
}

</mosaic_0001>

<bundles_post_ra>
// kernel: classwise_ece_loss.1
= control target key start
LH: loop header
LB: loop body
LE: loop exit
PB: predicated region body
PF: predicated region fallthrough
CT: control target
= control target key end

     0   :  { %7 = vsyncpa [#allocation3], 0  ;;  %s1346_s0 = inlined_call_operand.hbm [shape: f32[8,256], index: 0, kind: input, shape index: {}]   ;;  %s1347_s1 = inlined_call_operand.vmem [shape: s32[1,256], index: 1, kind: input, shape index: {}]   ;;  %s1348_s2 = inlined_call_operand.vmem [shape: f32[720,128], index: 2, kind: output, shape index: {}]  }
   0x1   :  { %9 = vsyncpa [#allocation3 + $0x1], 0  ;;  %s1031_s9 = smov 0   ;;  %s1033_s10 = smov 0  }
   0x2   :  { %s1035_s11 = smov 0   ;;  %s1037_s12 = smov 0  }
   0x3   :  { %s1039_s13 = smov 0  }
   0x4 LB: > { %s818_s14 = sadd.s32 4294967295, %s1012_s13   ;;  %s27_s15 = sadd.s32 1, %s1008_s12  ;;  %s1012_s13 = sphi %s1039_s13, %s15_s13   ;;  %s1008_s12 = sphi %s1037_s12, %s1359_s12   ;;  %s1004_s11 = sphi %s1035_s11, %s1358_s11   ;;  %s1000_s10 = sphi %s1033_s10, %s1336_s10   ;;  %s996_s9 = sphi %s1031_s9, %s1357_s9  }
   0x5   : > { %p29_p0 = scmp.ge.s32.totalorder %s27_s15, 2  ;;  %p993_p1 = scmp.ne.s32.totalorder %s1000_s10, 0 }
   0x6   : > { %p48_p2 = scmp.eq.s32.totalorder %s1012_s13, 0  ;;  %p53_p3 = scmp.ne.s32.totalorder %s1000_s10, %s996_s9 }
   0x7   : > { %s1361_s15 = smov (%p29_p0, %s27_s15), 0  ;;  %p54_p4 = scmp.eq.s32.totalorder %s818_s14, 0 }
   0x8   : > { %p49_p5 = por %p993_p1, %p48_p2  ;;  %p877_p7 = scmp.lt.s32.totalorder %s1012_s13, 2 }
   0x9   : > { %p1061_p6 = por %p54_p4, %p53_p3  ;;  %s1014_s17 = smov [#allocation2]  }
   0xa   : > { %s150_s18 = sshll.u32 %s1014_s17, 4  ;;  %p1066_p8 = pnand %p877_p7, %p49_p5  ;;  %s151_s18 = int_to_ptr.vmem [resolvable:$true] %s150_s18 }
   0xb   : > { %s1351_s16 = scalar_select %p1061_p6, 1, 0 }
   0xc   : > { %s1352_s19 = scalar_select %p1066_p8, 1, 0 }
   0xd   : > { %s935_s22 = scalar_lea.hbm %s1346_s0, 256  ;;  %p937_p12 = pneg %p1066_p8 }
   0xe   : > { %p936_p11 = scmp.ne.s32.totalorder %s1346_s0, %s935_s22  ;;  %p942_p1 = scmp.lt.u32.totalorder %s935_s22, %s935_s22 }
   0xf   : > { %p944_p2 = scmp.lt.u32.totalorder %s935_s22, %s1346_s0 }
  0x10   : > { %p938_p13 = pnand %p937_p12, %p936_p11 }
  0x11   : > { %p945_p3 = por %p944_p2, %p942_p1 }
  0x12   : > { %p939_p0 = pneg %p938_p13 }
  0x14   : > { %p946_p4 = pnand %p945_p3, %p939_p0 }
  0x16   : > { %949 = shalt.err (!%p946_p4)
}
  0x17   : > { %s950_s27 = scalar_lea.vmem %s151_s18, 256  ;;  %s957_s28 = scalar_lea.vmem %s151_s18, 512 }
  0x18   : > { %p951_p5 = scmp.ne.s32.totalorder %s151_s18, %s950_s27  ;;  %p958_p10 = scmp.lt.s32.totalorder %s151_s18, %s151_s18 }
  0x19   : > { %p959_p6 = scmp.lt.s32.totalorder %s957_s28, %s950_s27 }
  0x1a   : > { %p953_p7 = pnand %p951_p5, %p937_p12 }
  0x1b   : > { %p960_p8 = por %p959_p6, %p958_p10 }
  0x1c   : > { %p954_p9 = pneg %p953_p7 }
  0x1e   : > { %p961_p11 = pnand %p960_p8, %p954_p9 }
  0x20   : > { %964 = shalt.err (!%p961_p11)
}
  0x21   : > { %p1353_p13 = scmp.ne.s32.totalorder %s1352_s19, 0  ;;  %p1354_p0 = scmp.lt.s32.totalorder %s1012_s13, 3 }
  0x22   : > { %p1355_p1 = scmp.ge.s32.totalorder %s1012_s13, 1 }
  0x23   : > { %876 = dma.hbm_to_vmem [thread:$0]  (!%p1353_p13), %s1346_s0, 256, %s151_s18, [#allocation3]  }
  0x24   : > { %p170_p2 = pnand %p1355_p1, %p1354_p0 }
  0x25   : > { %s175_s3 = sand.u32 (!%p170_p2), 1, %s1000_s10   ;;  %p1356_p6 = scmp.ne.s32.totalorder (!%p170_p2), %s1351_s16, 0 }
  0x26   : > { %173 = sbr.rel (%p170_p2) target bundleno = 156 (0x9c), region = 28  ;;  %s826_s4 = sshll.u32 (!%p170_p2), %s175_s3, 4 }
  0x27   : > { %s176_s5 = scalar_lea.sflag (!%p170_p2), [#allocation3], %s175_s3  ;;  %s179_s6 = scalar_lea.vmem (!%p170_p2), [#allocation2], %s826_s4 }
  0x2d   : > { %990 = dma.done.wait (%p1356_p6), %s176_s5, 256  }
  0x2e   : > { %992 = vsyncadd (%p1356_p6), %s176_s5, 4294967040  ;;  %v277_v0 = vld [vmem:[%s179_s6] sm:$0xff]  ;;  %v278_v1 = vld [vmem:[%s179_s6 + $0x8] sm:$0xff]  ;;  %p212_p8 = scmp.lt.s32.totalorder %s1004_s11, 0  ;;  %v314_v32 = vlaneseq  ;;  %s829_s17 = sshll.u32 %s1004_s11, 8  ;;  %v1015_v59 = vmov 0.0  }
  0x2f   : > { %v280_v2 = vrot.slane %v277_v0, 4  ;;  %v286_v3 = vrot.slane %v278_v1, 4  ;;  %s222_s18 = smul.u32 45, %s1004_s11  ;;  %v319_v45 = vstv %s829_s17 }
  0x30   : > { %s213_s7 = scalar_select %p212_p8, %s1004_s11, 0  ;;  %v343_v33 = vshrl.u32 %v314_v32, 7  ;;  %v315_v37 = vand.u32 127, %v314_v32 }
  0x31   : > { %v281_v4 = vmax.f32 %v277_v0, %v280_v2  ;;  %v287_v5 = vmax.f32 %v278_v1, %v286_v3  ;;  %p223_p10 = scmp.lt.s32.totalorder %s222_s18, 89 }
  0x32   : > { %s827_s8 = sshll.u32 %s213_s7, 1  ;;  %v346_v40 = vsub.s32 0, %v343_v33  ;;  %v350_v43 = vsub.s32 1, %v343_v33  ;;  %v316_v44 = vadd.s32 128, %v315_v37  ;;  %v320_v50 = vadd.s32 %v319_v45, %v315_v37 }
  0x33   : > { %v282_v6 = vrot.slane %v281_v4, 2  ;;  %v288_v7 = vrot.slane %v287_v5, 2  ;;  %p215_p9 = scmp.lt.s32.totalorder %s827_s8, 1  ;;  %s1365_s18 = smov (!%p223_p10, %s222_s18), 89 }
  0x34   : > { %v321_v53 = vadd.s32 %v319_v45, %v316_v44  ;;  %vm322_vm1 = vcmp.lt.s32.totalorder %v320_v50, 256  ;;  %s828_s11 = sshll.u32 %s1365_s18, 3 }
  0x35   : > { %v283_v8 = vmax.f32 %v281_v4, %v282_v6  ;;  %v289_v9 = vmax.f32 %v287_v5, %v288_v7  ;;  %s1363_s8 = smov (!%p215_p9, %s827_s8), 1  ;;  %s1137_s21 = scalar_lea.vmem %s1348_s2, %s828_s11 }
  0x36   : > { %s217_s16 = scalar_lea.vmem %s1347_s1, %s1363_s8  ;;  %vm323_vm3 = vcmp.lt.s32.totalorder %v321_v53, 256 }
  0x37   : > { %v284_v10 = vrot.slane %v283_v8, 1  ;;  %v290_v11 = vrot.slane %v289_v9, 1  ;;  %v279_v42 = vld [vmem:[%s217_s16] sm:$0x3] }
  0x38   : > { %v347_v49 = vrot.slane %v279_v42, %v346_v40  ;;  %v351_v52 = vrot.slane %v279_v42, %v350_v43 }
  0x39   : > { %v285_v12 = vmax.f32 %v283_v8, %v284_v10  ;;  %v291_v13 = vmax.f32 %v289_v9, %v290_v11 }
  0x3a   : > { %vm352_vm0 = vcmp.eq.s32.totalorder %v343_v33, %v347_v49  ;;  %vm353_vm2 = vcmp.eq.s32.totalorder %v343_v33, %v351_v52 }
  0x3b   : > { %v292_v14 = vsub.f32 %v277_v0, %v285_v12  ;;  %v293_v15 = vsub.f32 %v278_v1, %v291_v13  ;;  %v1111_v60 = vsel %vm352_vm0, 1.0, %v1015_v59  ;;  %v1116_v63 = vsel %vm353_vm2, 1.0, %v1015_v59 }
  0x3d   : > { %v294_v16 = vmul.f32 1.442695, %v292_v14  ;;  %v296_v17 = vmul.f32 1.442695, %v293_v15 }
  0x3f   : > { %927 = vpow2.f32 %v294_v16 }
  0x40   : > { %929 = vpow2.f32 %v296_v17 }
  0x49   : > { %v928_v18 = vpop.eup %927 }
  0x4a   : > { %v930_v19 = vpop.eup %929  ;;  %v298_v20 = vrot.slane %v928_v18, 4 }
  0x4b   : > { %v304_v21 = vrot.slane %v930_v19, 4 }
  0x4c   : > { %v299_v22 = vadd.f32 %v928_v18, %v298_v20 }
  0x4d   : > { %v305_v23 = vadd.f32 %v930_v19, %v304_v21 }
  0x4e   : > { %v300_v24 = vrot.slane %v299_v22, 2 }
  0x4f   : > { %v306_v25 = vrot.slane %v305_v23, 2 }
  0x50   : > { %v301_v26 = vadd.f32 %v300_v24, %v299_v22 }
  0x51   : > { %v307_v27 = vadd.f32 %v306_v25, %v305_v23 }
  0x52   : > { %v302_v28 = vrot.slane %v301_v26, 1 }
  0x53   : > { %v308_v29 = vrot.slane %v307_v27, 1 }
  0x54   : > { %v303_v30 = vadd.f32 %v302_v28, %v301_v26 }
  0x55   : > { %v309_v31 = vadd.f32 %v308_v29, %v307_v27 }
  0x56   : > { %931 = vrcp.f32 %v303_v30 }
  0x57   : > { %933 = vrcp.f32 %v309_v31 }
  0x60   : > { %v932_v34 = vpop.eup %931 }
  0x61   : > { %v934_v35 = vpop.eup %933  ;;  %v1099_v36 = vmul.f32 %v932_v34, %v928_v18 }
  0x62   : > { %v1104_v38 = vmul.f32 %v934_v35, %v930_v19 }
  0x63   : > { %v324_v39 = vmul.f32 15.0, %v1099_v36 }
  0x64   : > { %v325_v41 = vmul.f32 15.0, %v1104_v38 }
  0x65   : > { %v326_v46 = vceil.f32 %v324_v39 }
  0x66   : > { %v327_v47 = vceil.f32 %v325_v41 }
  0x67   : > { %v867_v48 = vtrunc.f32 %v326_v46 }
  0x68   : > { %v869_v51 = vtrunc.f32 %v327_v47 }
  0x69   : > { %v868_v54 = vcvt.f32.s32 %v867_v48 }
  0x6a   : > { %v870_v55 = vcvt.f32.s32 %v869_v51 }
  0x6b   : > { %v830_v56 = vadd.s32 4294967295, %v868_v54 }
  0x6c   : > { %v831_v57 = vadd.s32 4294967295, %v870_v55 }
  0x6d   : > { %vm332_vm4 = vcmp.lt.s32.totalorder %v830_v56, 14 }
  0x6e   : > { %v333_v58 = vsel %vm332_vm4, %v830_v56, 14  ;;  %vm334_vm5 = vcmp.lt.s32.totalorder %v831_v57, 14 }
  0x6f   : > { %v335_v61 = vsel %vm334_vm5, %v831_v57, 14  ;;  %v1113_v62 = vsel %vm322_vm1, %v333_v58, 4294967295 }
  0x70   : > { %v1118_v0 = vsel %vm323_vm3, %v335_v61, 4294967295  ;;  %vm358_vm6 = vcmp.eq.s32.totalorder %v1113_v62, 0  ;;  %vm383_vm7 = vcmp.eq.s32.totalorder %v1113_v62, 1  ;;  %vm408_vm8 = vcmp.eq.s32.totalorder %v1113_v62, 2 }
  0x71   : > { %v834_v1 = vsel %vm358_vm6, 1.0, %v1015_v59  ;;  %vm366_vm9 = vcmp.eq.s32.totalorder %v1118_v0, 0  ;;  %v362_v2 = vsel %vm358_vm6, %v1099_v36, 0.0  ;;  %v364_v3 = vsel %vm358_vm6, %v1111_v60, 0.0 }
  0x72   : > { %v835_v4 = vsel %vm366_vm9, 1.0, %v1015_v59  ;;  %v370_v5 = vsel %vm366_vm9, %v1104_v38, 0.0  ;;  %v372_v6 = vsel %vm366_vm9, %v1116_v63, 0.0  ;;  %v836_v7 = vsel %vm383_vm7, 1.0, %v1015_v59 }
  0x73   : > { %v369_v8 = vadd.f32 %v835_v4, %v834_v1  ;;  %v371_v9 = vadd.f32 %v370_v5, %v362_v2  ;;  %v373_v10 = vadd.f32 %v372_v6, %v364_v3  ;;  %vm391_vm10 = vcmp.eq.s32.totalorder %v1118_v0, 1 }
  0x74   : > { %v837_v11 = vsel %vm391_vm10, 1.0, %v1015_v59  ;;  %v387_v12 = vsel %vm383_vm7, %v1099_v36, 0.0  ;;  %v395_v13 = vsel %vm391_vm10, %v1104_v38, 0.0  ;;  %v389_v14 = vsel %vm383_vm7, %v1111_v60, 0.0 }
  0x75   : > { %v394_v15 = vadd.f32 %v837_v11, %v836_v7  ;;  %v396_v16 = vadd.f32 %v395_v13, %v387_v12  ;;  %v397_v17 = vsel %vm391_vm10, %v1116_v63, 0.0  ;;  %v838_v18 = vsel %vm408_vm8, 1.0, %v1015_v59  ;;  %376 = vst [vmem:[%s1137_s21] sm:$0xff] %v369_v8  ;;  %379 = vst [vmem:[%s1137_s21 + $0x8] sm:$0xff] %v371_v9 }
  0x76   : > { %vm416_vm11 = vcmp.eq.s32.totalorder %v1118_v0, 2  ;;  %382 = vst [vmem:[%s1137_s21 + $0x10] sm:$0xff] %v373_v10  ;;  %v398_v19 = vadd.f32 %v397_v17, %v389_v14  ;;  %v412_v21 = vsel %vm408_vm8, %v1099_v36, 0.0  ;;  %v414_v24 = vsel %vm408_vm8, %v1111_v60, 0.0 }
  0x77   : > { %v839_v20 = vsel %vm416_vm11, 1.0, %v1015_v59  ;;  %v420_v23 = vsel %vm416_vm11, %v1104_v38, 0.0  ;;  %401 = vst [vmem:[%s1137_s21 + $0x18] sm:$0xff] %v394_v15  ;;  %v422_v26 = vsel %vm416_vm11, %v1116_v63, 0.0  ;;  %vm433_vm12 = vcmp.eq.s32.totalorder %v1113_v62, 3  ;;  %404 = vst [vmem:[%s1137_s21 + $0x20] sm:$0xff] %v396_v16 }
  0x78   : > { %v419_v22 = vadd.f32 %v839_v20, %v838_v18  ;;  %v421_v25 = vadd.f32 %v420_v23, %v412_v21  ;;  %v423_v27 = vadd.f32 %v422_v26, %v414_v24  ;;  %v840_v28 = vsel %vm433_vm12, 1.0, %v1015_v59  ;;  %407 = vst [vmem:[%s1137_s21 + $0x28] sm:$0xff] %v398_v19 }
  0x79   : > { %vm441_vm13 = vcmp.eq.s32.totalorder %v1118_v0, 3  ;;  %v437_v30 = vsel %vm433_vm12, %v1099_v36, 0.0  ;;  %v439_v34 = vsel %vm433_vm12, %v1111_v60, 0.0  ;;  %vm458_vm14 = vcmp.eq.s32.totalorder %v1113_v62, 4 }
  0x7a   : > { %v841_v29 = vsel %vm441_vm13, 1.0, %v1015_v59  ;;  %v445_v31 = vsel %vm441_vm13, %v1104_v38, 0.0  ;;  %426 = vst [vmem:[%s1137_s21 + $0x30] sm:$0xff] %v419_v22  ;;  %429 = vst [vmem:[%s1137_s21 + $0x38] sm:$0xff] %v421_v25  ;;  %v447_v35 = vsel %vm441_vm13, %v1116_v63, 0.0  ;;  %vm466_vm15 = vcmp.eq.s32.totalorder %v1118_v0, 4 }
  0x7b   : > { %v444_v32 = vadd.f32 %v841_v29, %v840_v28  ;;  %v446_v33 = vadd.f32 %v445_v31, %v437_v30  ;;  %vm483_vm0 = vcmp.eq.s32.totalorder %v1113_v62, 5  ;;  %432 = vst [vmem:[%s1137_s21 + $0x40] sm:$0xff] %v423_v27  ;;  %v448_v37 = vadd.f32 %v447_v35, %v439_v34 }
  0x7c   : > { %v842_v39 = vsel %vm458_vm14, 1.0, %v1015_v59  ;;  %v843_v40 = vsel %vm466_vm15, 1.0, %v1015_v59  ;;  %v462_v41 = vsel %vm458_vm14, %v1099_v36, 0.0  ;;  %v470_v42 = vsel %vm466_vm15, %v1104_v38, 0.0 }
  0x7d   : > { %v464_v43 = vsel %vm458_vm14, %v1111_v60, 0.0  ;;  %451 = vst [vmem:[%s1137_s21 + $0x48] sm:$0xff] %v444_v32  ;;  %454 = vst [vmem:[%s1137_s21 + $0x50] sm:$0xff] %v446_v33  ;;  %v469_v44 = vadd.f32 %v843_v40, %v842_v39  ;;  %v471_v45 = vadd.f32 %v470_v42, %v462_v41  ;;  %v472_v46 = vsel %vm466_vm15, %v1116_v63, 0.0 }
  0x7e   : > { %v473_v47 = vadd.f32 %v472_v46, %v464_v43  ;;  %v844_v48 = vsel %vm483_vm0, 1.0, %v1015_v59  ;;  %vm491_vm1 = vcmp.eq.s32.totalorder %v1118_v0, 5  ;;  %v487_v49 = vsel %vm483_vm0, %v1099_v36, 0.0  ;;  %457 = vst [vmem:[%s1137_s21 + $0x58] sm:$0xff] %v448_v37 }
  0x7f   : > { %v845_v50 = vsel %vm491_vm1, 1.0, %v1015_v59  ;;  %v495_v51 = vsel %vm491_vm1, %v1104_v38, 0.0  ;;  %v489_v54 = vsel %vm483_vm0, %v1111_v60, 0.0  ;;  %476 = vst [vmem:[%s1137_s21 + $0x60] sm:$0xff] %v469_v44  ;;  %479 = vst [vmem:[%s1137_s21 + $0x68] sm:$0xff] %v471_v45  ;;  %v497_v55 = vsel %vm491_vm1, %v1116_v63, 0.0 }
  0x80   : > { %v494_v52 = vadd.f32 %v845_v50, %v844_v48  ;;  %v496_v53 = vadd.f32 %v495_v51, %v487_v49  ;;  %vm508_vm2 = vcmp.eq.s32.totalorder %v1113_v62, 6  ;;  %vm516_vm3 = vcmp.eq.s32.totalorder %v1118_v0, 6  ;;  %482 = vst [vmem:[%s1137_s21 + $0x70] sm:$0xff] %v473_v47 }
  0x81   : > { %vm533_vm4 = vcmp.eq.s32.totalorder %v1113_v62, 7  ;;  %v498_v56 = vadd.f32 %v497_v55, %v489_v54  ;;  %v846_v57 = vsel %vm508_vm2, 1.0, %v1015_v59  ;;  %v847_v58 = vsel %vm516_vm3, 1.0, %v1015_v59 }
  0x82   : > { %v512_v61 = vsel %vm508_vm2, %v1099_v36, 0.0  ;;  %v520_v1 = vsel %vm516_vm3, %v1104_v38, 0.0  ;;  %v514_v2 = vsel %vm508_vm2, %v1111_v60, 0.0  ;;  %501 = vst [vmem:[%s1137_s21 + $0x78] sm:$0xff] %v494_v52  ;;  %504 = vst [vmem:[%s1137_s21 + $0x80] sm:$0xff] %v496_v53  ;;  %v519_v3 = vadd.f32 %v847_v58, %v846_v57 }
  0x83   : > { %v521_v4 = vadd.f32 %v520_v1, %v512_v61  ;;  %v522_v5 = vsel %vm516_vm3, %v1116_v63, 0.0  ;;  %v848_v7 = vsel %vm533_vm4, 1.0, %v1015_v59  ;;  %vm541_vm5 = vcmp.eq.s32.totalorder %v1118_v0, 7  ;;  %507 = vst [vmem:[%s1137_s21 + $0x88] sm:$0xff] %v498_v56 }
  0x84   : > { %v523_v6 = vadd.f32 %v522_v5, %v514_v2  ;;  %v537_v8 = vsel %vm533_vm4, %v1099_v36, 0.0  ;;  %v849_v9 = vsel %vm541_vm5, 1.0, %v1015_v59  ;;  %v545_v10 = vsel %vm541_vm5, %v1104_v38, 0.0  ;;  %526 = vst [vmem:[%s1137_s21 + $0x90] sm:$0xff] %v519_v3 }
  0x85   : > { %v544_v11 = vadd.f32 %v849_v9, %v848_v7  ;;  %v546_v12 = vadd.f32 %v545_v10, %v537_v8  ;;  %v539_v13 = vsel %vm533_vm4, %v1111_v60, 0.0  ;;  %529 = vst [vmem:[%s1137_s21 + $0x98] sm:$0xff] %v521_v4  ;;  %v547_v14 = vsel %vm541_vm5, %v1116_v63, 0.0 }
  0x86   : > { %vm558_vm6 = vcmp.eq.s32.totalorder %v1113_v62, 8  ;;  %vm566_vm7 = vcmp.eq.s32.totalorder %v1118_v0, 8  ;;  %vm583_vm8 = vcmp.eq.s32.totalorder %v1113_v62, 9  ;;  %532 = vst [vmem:[%s1137_s21 + $0xa0] sm:$0xff] %v523_v6  ;;  %v548_v15 = vadd.f32 %v547_v14, %v539_v13 }
  0x87   : > { %v850_v16 = vsel %vm558_vm6, 1.0, %v1015_v59  ;;  %v851_v17 = vsel %vm566_vm7, 1.0, %v1015_v59  ;;  %v562_v18 = vsel %vm558_vm6, %v1099_v36, 0.0  ;;  %v570_v19 = vsel %vm566_vm7, %v1104_v38, 0.0  ;;  %551 = vst [vmem:[%s1137_s21 + $0xa8] sm:$0xff] %v544_v11  ;;  %554 = vst [vmem:[%s1137_s21 + $0xb0] sm:$0xff] %v546_v12 }
  0x88   : > { %v564_v20 = vsel %vm558_vm6, %v1111_v60, 0.0  ;;  %v569_v21 = vadd.f32 %v851_v17, %v850_v16  ;;  %v571_v22 = vadd.f32 %v570_v19, %v562_v18  ;;  %v572_v23 = vsel %vm566_vm7, %v1116_v63, 0.0  ;;  %557 = vst [vmem:[%s1137_s21 + $0xb8] sm:$0xff] %v548_v15 }
  0x89   : > { %v573_v24 = vadd.f32 %v572_v23, %v564_v20  ;;  %v852_v25 = vsel %vm583_vm8, 1.0, %v1015_v59  ;;  %vm591_vm9 = vcmp.eq.s32.totalorder %v1118_v0, 9  ;;  %v587_v26 = vsel %vm583_vm8, %v1099_v36, 0.0 }
  0x8a   : > { %v853_v27 = vsel %vm591_vm9, 1.0, %v1015_v59  ;;  %v595_v28 = vsel %vm591_vm9, %v1104_v38, 0.0  ;;  %v589_v31 = vsel %vm583_vm8, %v1111_v60, 0.0  ;;  %576 = vst [vmem:[%s1137_s21 + $0xc0] sm:$0xff] %v569_v21  ;;  %579 = vst [vmem:[%s1137_s21 + $0xc8] sm:$0xff] %v571_v22  ;;  %v597_v32 = vsel %vm591_vm9, %v1116_v63, 0.0 }
  0x8b   : > { %v594_v29 = vadd.f32 %v853_v27, %v852_v25  ;;  %v596_v30 = vadd.f32 %v595_v28, %v587_v26  ;;  %vm608_vm10 = vcmp.eq.s32.totalorder %v1113_v62, 10  ;;  %vm616_vm11 = vcmp.eq.s32.totalorder %v1118_v0, 10  ;;  %582 = vst [vmem:[%s1137_s21 + $0xd0] sm:$0xff] %v573_v24 }
  0x8c   : > { %vm633_vm12 = vcmp.eq.s32.totalorder %v1113_v62, 11  ;;  %v598_v33 = vadd.f32 %v597_v32, %v589_v31  ;;  %v854_v34 = vsel %vm608_vm10, 1.0, %v1015_v59  ;;  %v855_v35 = vsel %vm616_vm11, 1.0, %v1015_v59 }
  0x8d   : > { %v612_v37 = vsel %vm608_vm10, %v1099_v36, 0.0  ;;  %v620_v39 = vsel %vm616_vm11, %v1104_v38, 0.0  ;;  %v614_v40 = vsel %vm608_vm10, %v1111_v60, 0.0  ;;  %601 = vst [vmem:[%s1137_s21 + $0xd8] sm:$0xff] %v594_v29  ;;  %604 = vst [vmem:[%s1137_s21 + $0xe0] sm:$0xff] %v596_v30  ;;  %v619_v41 = vadd.f32 %v855_v35, %v854_v34 }
  0x8e   : > { %v621_v42 = vadd.f32 %v620_v39, %v612_v37  ;;  %v622_v43 = vsel %vm616_vm11, %v1116_v63, 0.0  ;;  %v856_v45 = vsel %vm633_vm12, 1.0, %v1015_v59  ;;  %vm641_vm13 = vcmp.eq.s32.totalorder %v1118_v0, 11  ;;  %607 = vst [vmem:[%s1137_s21 + $0xe8] sm:$0xff] %v598_v33 }
  0x8f   : > { %v623_v44 = vadd.f32 %v622_v43, %v614_v40  ;;  %v637_v46 = vsel %vm633_vm12, %v1099_v36, 0.0  ;;  %v857_v47 = vsel %vm641_vm13, 1.0, %v1015_v59  ;;  %v645_v48 = vsel %vm641_vm13, %v1104_v38, 0.0  ;;  %626 = vst [vmem:[%s1137_s21 + $0xf0] sm:$0xff] %v619_v41 }
  0x90   : > { %v644_v49 = vadd.f32 %v857_v47, %v856_v45  ;;  %v646_v50 = vadd.f32 %v645_v48, %v637_v46  ;;  %v639_v51 = vsel %vm633_vm12, %v1111_v60, 0.0  ;;  %629 = vst [vmem:[%s1137_s21 + $0xf8] sm:$0xff] %v621_v42  ;;  %v647_v52 = vsel %vm641_vm13, %v1116_v63, 0.0 }
  0x91   : > { %vm658_vm14 = vcmp.eq.s32.totalorder %v1113_v62, 12  ;;  %vm666_vm15 = vcmp.eq.s32.totalorder %v1118_v0, 12  ;;  %vm683_vm0 = vcmp.eq.s32.totalorder %v1113_v62, 13  ;;  %632 = vst [vmem:[%s1137_s21 + $0x100] sm:$0xff] %v623_v44  ;;  %v648_v53 = vadd.f32 %v647_v52, %v639_v51 }
  0x92   : > { %v858_v54 = vsel %vm658_vm14, 1.0, %v1015_v59  ;;  %v859_v55 = vsel %vm666_vm15, 1.0, %v1015_v59  ;;  %v662_v56 = vsel %vm658_vm14, %v1099_v36, 0.0  ;;  %v670_v57 = vsel %vm666_vm15, %v1104_v38, 0.0  ;;  %651 = vst [vmem:[%s1137_s21 + $0x108] sm:$0xff] %v644_v49  ;;  %654 = vst [vmem:[%s1137_s21 + $0x110] sm:$0xff] %v646_v50 }
  0x93   : > { %v664_v58 = vsel %vm658_vm14, %v1111_v60, 0.0  ;;  %v669_v61 = vadd.f32 %v859_v55, %v858_v54  ;;  %v671_v1 = vadd.f32 %v670_v57, %v662_v56  ;;  %v672_v2 = vsel %vm666_vm15, %v1116_v63, 0.0  ;;  %657 = vst [vmem:[%s1137_s21 + $0x118] sm:$0xff] %v648_v53 }
  0x94   : > { %v673_v3 = vadd.f32 %v672_v2, %v664_v58  ;;  %v860_v4 = vsel %vm683_vm0, 1.0, %v1015_v59  ;;  %vm691_vm1 = vcmp.eq.s32.totalorder %v1118_v0, 13  ;;  %v687_v5 = vsel %vm683_vm0, %v1099_v36, 0.0 }
  0x95   : > { %v861_v6 = vsel %vm691_vm1, 1.0, %v1015_v59  ;;  %v695_v7 = vsel %vm691_vm1, %v1104_v38, 0.0  ;;  %v689_v10 = vsel %vm683_vm0, %v1111_v60, 0.0  ;;  %676 = vst [vmem:[%s1137_s21 + $0x120] sm:$0xff] %v669_v61  ;;  %679 = vst [vmem:[%s1137_s21 + $0x128] sm:$0xff] %v671_v1  ;;  %v697_v11 = vsel %vm691_vm1, %v1116_v63, 0.0 }
  0x96   : > { %v694_v8 = vadd.f32 %v861_v6, %v860_v4  ;;  %v696_v9 = vadd.f32 %v695_v7, %v687_v5  ;;  %vm708_vm2 = vcmp.eq.s32.totalorder %v1113_v62, 14  ;;  %vm716_vm3 = vcmp.eq.s32.totalorder %v1118_v0, 14  ;;  %682 = vst [vmem:[%s1137_s21 + $0x130] sm:$0xff] %v673_v3 }
  0x97   : > { %v698_v12 = vadd.f32 %v697_v11, %v689_v10  ;;  %v862_v13 = vsel %vm708_vm2, 1.0, %v1015_v59  ;;  %v863_v14 = vsel %vm716_vm3, 1.0, %v1015_v59  ;;  %v712_v15 = vsel %vm708_vm2, %v1099_v36, 0.0 }
  0x98   : > { %v720_v16 = vsel %vm716_vm3, %v1104_v38, 0.0  ;;  %v714_v17 = vsel %vm708_vm2, %v1111_v60, 0.0  ;;  %701 = vst [vmem:[%s1137_s21 + $0x138] sm:$0xff] %v694_v8  ;;  %704 = vst [vmem:[%s1137_s21 + $0x140] sm:$0xff] %v696_v9  ;;  %v719_v62 = vadd.f32 %v863_v14, %v862_v13  ;;  %v722_v0 = vsel %vm716_vm3, %v1116_v63, 0.0 }
  0x99   : > { %v721_v18 = vadd.f32 %v720_v16, %v712_v15  ;;  %v723_v19 = vadd.f32 %v722_v0, %v714_v17  ;;  %707 = vst [vmem:[%s1137_s21 + $0x148] sm:$0xff] %v698_v12 }
  0x9a   : > { %726 = vst [vmem:[%s1137_s21 + $0x150] sm:$0xff] %v719_v62 }
  0x9b   : > { %729 = vst [vmem:[%s1137_s21 + $0x158] sm:$0xff] %v721_v18  ;;  %732 = vst [vmem:[%s1137_s21 + $0x160] sm:$0xff] %v723_v19 }
  0x9c PF: > { %s15_s13 = sadd.s32 1, %s1012_s13   ;;  %s1357_s9 = smov %s1000_s10 }
  0x9d   : > { %p12_p12 = scmp.ge.s32.totalorder %s15_s13, 4   ;;  %s1336_s10 = smov 0  }
  0x9e   : > { %s1358_s11 = smov %s1008_s12  ;;  %s1359_s12 = smov %s1361_s15 }
  0x9f   :  { %14 = sbr.rel (!%p12_p12) target bundleno = 4 (0x4), region = 75 }
  0xa6   :  { %755 = vsyncpa [#allocation3], 1 }
  0xa7   :  { %757 = vsyncpa [#allocation3 + $0x1], 1 }

</bundles_post_ra>
